<compile_context>
chip_gen: v7x
topology: tpu7x:2x2x1
jax: 0.10.0
libtpu: 0.0.40
codegen_flags: <defaults>
</compile_context>

<pallas_src>
import functools

import jax
import jax.numpy as jnp
from jax.experimental import pallas as pl
from jax.experimental.pallas import tpu as pltpu


def _mlp_res_kernel(x_ref, w1_ref, b1_ref, w2_ref, ws_ref, bcat_ref, o_ref):
    # x_ref: (Cin, TN) tile (batch dim squeezed); weights are squeezed Conv1d weights.
    cd = w1_ref.dtype                                     # matmul compute dtype
    x = x_ref[...].astype(cd)                             # (Cin, TN)

    # Shortcut matmul (independent of conv_1's VPU epilogue -> better MXU/VPU overlap).
    out = jnp.dot(ws_ref[...], x, preferred_element_type=jnp.float32)      # (Cout, TN) f32

    # conv_1 (1x1) + bias + ReLU   (f32 accumulation / elementwise).
    h = jnp.dot(w1_ref[...], x, preferred_element_type=jnp.float32)        # (H, TN) f32
    h = jnp.maximum(h + b1_ref[...], 0.0)

    # conv_2 accumulated into the shortcut result; fused bias bcat = b2 + bs.
    out = out + jnp.dot(w2_ref[...], h.astype(cd), preferred_element_type=jnp.float32)
    out = out + bcat_ref[...]                                              # (Cout, TN) f32

    o_ref[...] = out.astype(o_ref.dtype)


def _select_tile(N, B, tn_max):
    """Pick the point-axis tile: a multiple of 128 that (preferably) divides N, as
    large as possible up to tn_max, while keeping the grid at >= 2 steps so a v7x
    chip (2 TensorCores) never idles half its compute."""
    tn_max = max(128, (tn_max // 128) * 128)
    divisors = [t for t in range(128, min(tn_max, N) + 1, 128) if N % t == 0]
    if divisors:
        tn = divisors[-1]
        if B * (N // tn) < 2:
            smaller = [t for t in divisors if B * (N // t) >= 2]
            if smaller:
                tn = smaller[-1]
        return tn, False                      # no padding needed
    # Ragged N: fall back to padding the tail (correct, but an extra HBM pass).
    # TODO(synk): handle the ragged last tile with a masked store instead of jnp.pad.
    tn = min(tn_max, pl.cdiv(N, 128) * 128)
    return tn, True


def mlp_res_forward(x_bcn, params, *, tn=1024, matmul_dtype=None):
    """x_bcn: (B, Cin, N) -> (B, Cout, N), matching the PyTorch module (NCW)."""
    w1, b1, w2, b2, ws, bs = params
    B, Cin, N = x_bcn.shape
    H = w1.shape[0]
    Cout = w2.shape[0]

    if matmul_dtype is None:
        # f32 matmul is emulated on the bf16 MXU; default to bf16 inputs with f32
        # accumulation.  Pass matmul_dtype=jnp.float32 for exact numerics.
        matmul_dtype = jnp.bfloat16 if x_bcn.dtype == jnp.float32 else x_bcn.dtype

    w1c = w1.astype(matmul_dtype)                                   # (H, Cin)
    w2c = w2.astype(matmul_dtype)                                   # (Cout, H)
    wsc = ws.astype(matmul_dtype)                                   # (Cout, Cin)
    b1c = b1.astype(jnp.float32)                                    # (H, 1)
    bcat = (b2 + bs).astype(jnp.float32)                            # (Cout, 1) fused bias

    tile_n, needs_pad = _select_tile(N, B, tn)
    n_tiles = pl.cdiv(N, tile_n)
    Np = n_tiles * tile_n
    xp = x_bcn if not needs_pad else jnp.pad(x_bcn, ((0, 0), (0, 0), (0, Np - N)))

    out = pl.pallas_call(
        _mlp_res_kernel,
        out_shape=jax.ShapeDtypeStruct((B, Cout, Np), x_bcn.dtype),
        grid_spec=pltpu.PrefetchScalarGridSpec(
            num_scalar_prefetch=0,
            grid=(B, n_tiles),
            in_specs=[
                pl.BlockSpec((pl.Squeezed(), Cin, tile_n), lambda b, j: (b, 0, j)),  # x tile
                pl.BlockSpec((H, Cin),    lambda b, j: (0, 0)),     # W1 (VMEM-resident)
                pl.BlockSpec((H, 1),      lambda b, j: (0, 0)),     # b1
                pl.BlockSpec((Cout, H),   lambda b, j: (0, 0)),     # W2
                pl.BlockSpec((Cout, Cin), lambda b, j: (0, 0)),     # Ws
                pl.BlockSpec((Cout, 1),   lambda b, j: (0, 0)),     # b2 + bs
            ],
            out_specs=pl.BlockSpec((pl.Squeezed(), Cout, tile_n), lambda b, j: (b, 0, j)),
        ),
        compiler_params=pltpu.CompilerParams(
            dimension_semantics=("parallel", "parallel"),
        ),
    )(xp, w1c, b1c, w2c, wsc, bcat)

    return out if Np == N else out[:, :, :N]


def init_params(key, in_dim, hidden_dim, out_dim, dtype=jnp.float32):
    """Deterministic synthetic parameters in PyTorch Conv1d layout.

    Conv1d weight (Cout, Cin, 1) is stored squeezed as (Cout, Cin); bias as (Cout, 1).
    """
    k1, k2, k3, k4, k5, k6 = jax.random.split(key, 6)
    s1 = 1.0 / jnp.sqrt(in_dim)
    s2 = 1.0 / jnp.sqrt(hidden_dim)
    w1 = jax.random.uniform(k1, (hidden_dim, in_dim), dtype, -s1, s1)
    b1 = jax.random.uniform(k2, (hidden_dim, 1), dtype, -s1, s1)
    w2 = jax.random.uniform(k3, (out_dim, hidden_dim), dtype, -s2, s2)
    b2 = jax.random.uniform(k4, (out_dim, 1), dtype, -s2, s2)
    ws = jax.random.uniform(k5, (out_dim, in_dim), dtype, -s1, s1)
    bs = jax.random.uniform(k6, (out_dim, 1), dtype, -s1, s1)
    return (w1, b1, w2, b2, ws, bs)


def mlp_res_reference(x_bcn, params):
    """Plain-JAX reference reproducing the PyTorch semantics (NCW)."""
    w1, b1, w2, b2, ws, bs = params
    h = jnp.maximum(jnp.einsum("hc,bcn->bhn", w1, x_bcn) + b1[None], 0.0)
    out = jnp.einsum("oh,bhn->bon", w2, h) + b2[None]
    sc = jnp.einsum("oc,bcn->bon", ws, x_bcn) + bs[None]
    return out + sc


if __name__ == "__main__":
    # Small shapes consistent with the module defaults (in_dim == out_dim == 128).
    B, IN_DIM, HIDDEN_DIM, OUT_DIM, N = 2, 128, 128, 128, 512

    key = jax.random.PRNGKey(0)
    k_x, k_p = jax.random.split(key)
    x = jax.random.normal(k_x, (B, IN_DIM, N), dtype=jnp.float32)   # (B, C, n) NCW
    params = init_params(k_p, IN_DIM, HIDDEN_DIM, OUT_DIM)

    ref = mlp_res_reference(x, params)

    # Exact f32 matmul path.
    fwd_f32 = jax.jit(functools.partial(mlp_res_forward, matmul_dtype=jnp.float32))
    out_f32 = jax.block_until_ready(fwd_f32(x, params))
    assert out_f32.shape == (B, OUT_DIM, N)
    assert jnp.allclose(out_f32, ref, atol=1e-4, rtol=1e-4), "f32 mismatch vs reference"

    # Default fast path: bf16 matmul inputs, f32 accumulation (looser tolerance).
    fwd_fast = jax.jit(mlp_res_forward)
    out_fast = jax.block_until_ready(fwd_fast(x, params))
    assert out_fast.shape == (B, OUT_DIM, N)
    assert jnp.allclose(out_fast, ref, atol=2e-1, rtol=5e-2), "bf16 mismatch vs reference"

    print("KERNEL_OK")
</pallas_src>

<mosaic_0001>
module attributes {stable_mosaic.version = 11 : i64} {
  func.func @_mlp_res_kernel(%arg0: i32, %arg1: i32, %arg2: memref<1x128x512xf32, #tpu.memory_space<vmem>>, %arg3: memref<128x128xf32, #tpu.memory_space<vmem>>, %arg4: memref<128x1xf32, #tpu.memory_space<vmem>>, %arg5: memref<128x128xf32, #tpu.memory_space<vmem>>, %arg6: memref<128x128xf32, #tpu.memory_space<vmem>>, %arg7: memref<128x1xf32, #tpu.memory_space<vmem>>, %arg8: memref<1x128x512xf32, #tpu.memory_space<vmem>>) attributes {dimension_semantics = [#tpu.dimension_semantics<parallel>, #tpu.dimension_semantics<parallel>], iteration_bounds = array<i64: 2, 1>, scalar_prefetch = 0 : i64, scratch_operands = 0 : i64, tpu.core_type = #tpu.core_type<tc>, window_params = [{transform_indices = @transform_0, window_bounds = array<i64: 1, 128, 512>}, {pipeline_mode = #tpu.pipeline_mode<synchronous>, transform_indices = @transform_1, window_bounds = array<i64: 128, 128>}, {pipeline_mode = #tpu.pipeline_mode<synchronous>, transform_indices = @transform_2, window_bounds = array<i64: 128, 1>}, {pipeline_mode = #tpu.pipeline_mode<synchronous>, transform_indices = @transform_3, window_bounds = array<i64: 128, 128>}, {pipeline_mode = #tpu.pipeline_mode<synchronous>, transform_indices = @transform_4, window_bounds = array<i64: 128, 128>}, {pipeline_mode = #tpu.pipeline_mode<synchronous>, transform_indices = @transform_5, window_bounds = array<i64: 128, 1>}, {transform_indices = @transform_6, window_bounds = array<i64: 1, 128, 512>}]} {
    %c0 = arith.constant 0 : index
    %c0_0 = arith.constant 0 : index
    %c0_1 = arith.constant 0 : index
    %0 = vector.load %arg2[%c0, %c0_0, %c0_1] : memref<1x128x512xf32, #tpu.memory_space<vmem>>, vector<1x128x512xf32>
    %1 = vector.shape_cast %0 : vector<1x128x512xf32> to vector<128x512xf32>
    %c0_2 = arith.constant 0 : index
    %c0_3 = arith.constant 0 : index
    %2 = vector.load %arg6[%c0_2, %c0_3] : memref<128x128xf32, #tpu.memory_space<vmem>>, vector<128x128xf32>
    %cst = arith.constant dense<0.000000e+00> : vector<128x512xf32>
    %3 = tpu.matmul %2, %1, %cst {dimension_numbers = #tpu.dot_dimension_numbers<[1], [0], [0], [1], [0, 0, 1, 1], [], []>} : vector<128x128xf32>, vector<128x512xf32>, vector<128x512xf32> -> vector<128x512xf32>
    %c0_4 = arith.constant 0 : index
    %c0_5 = arith.constant 0 : index
    %4 = vector.load %arg3[%c0_4, %c0_5] : memref<128x128xf32, #tpu.memory_space<vmem>>, vector<128x128xf32>
    %cst_6 = arith.constant dense<0.000000e+00> : vector<128x512xf32>
    %5 = tpu.matmul %4, %1, %cst_6 {dimension_numbers = #tpu.dot_dimension_numbers<[1], [0], [0], [1], [0, 0, 1, 1], [], []>} : vector<128x128xf32>, vector<128x512xf32>, vector<128x512xf32> -> vector<128x512xf32>
    %c0_7 = arith.constant 0 : index
    %c0_8 = arith.constant 0 : index
    %6 = vector.load %arg4[%c0_7, %c0_8] : memref<128x1xf32, #tpu.memory_space<vmem>>, vector<128x1xf32>
    %7 = vector.broadcast %6 : vector<128x1xf32> to vector<128x512xf32>
    %8 = arith.addf %5, %7 : vector<128x512xf32>
    %cst_9 = arith.constant 0.000000e+00 : f32
    %9 = vector.broadcast %cst_9 : f32 to vector<128x512xf32>
    %10 = arith.maximumf %8, %9 : vector<128x512xf32>
    %c0_10 = arith.constant 0 : index
    %c0_11 = arith.constant 0 : index
    %11 = vector.load %arg5[%c0_10, %c0_11] : memref<128x128xf32, #tpu.memory_space<vmem>>, vector<128x128xf32>
    %cst_12 = arith.constant dense<0.000000e+00> : vector<128x512xf32>
    %12 = tpu.matmul %11, %10, %cst_12 {dimension_numbers = #tpu.dot_dimension_numbers<[1], [0], [0], [1], [0, 0, 1, 1], [], []>} : vector<128x128xf32>, vector<128x512xf32>, vector<128x512xf32> -> vector<128x512xf32>
    %13 = arith.addf %3, %12 : vector<128x512xf32>
    %c0_13 = arith.constant 0 : index
    %c0_14 = arith.constant 0 : index
    %14 = vector.load %arg7[%c0_13, %c0_14] : memref<128x1xf32, #tpu.memory_space<vmem>>, vector<128x1xf32>
    %15 = vector.broadcast %14 : vector<128x1xf32> to vector<128x512xf32>
    %16 = arith.addf %13, %15 : vector<128x512xf32>
    %c0_15 = arith.constant 0 : index
    %c0_16 = arith.constant 0 : index
    %c0_17 = arith.constant 0 : index
    %17 = vector.load %arg8[%c0_15, %c0_16, %c0_17] : memref<1x128x512xf32, #tpu.memory_space<vmem>>, vector<1x128x512xf32>
    %18 = vector.shape_cast %17 : vector<1x128x512xf32> to vector<128x512xf32>
    %19 = vector.shape_cast %16 : vector<128x512xf32> to vector<1x128x512xf32>
    tpu.vector_store %arg8[%c0_15, %c0_16, %c0_17], %19 {strides = array<i32>} : memref<1x128x512xf32, #tpu.memory_space<vmem>>, vector<1x128x512xf32>,
    return
  }
  func.func @transform_0(%arg0: i32, %arg1: i32) -> (i32, i32, i32) {
    %c0_i32 = arith.constant 0 : i32
    %c0_i32_0 = arith.constant 0 : i32
    return %arg0, %c0_i32, %arg1 : i32, i32, i32
  }
  func.func @transform_1(%arg0: i32, %arg1: i32) -> (i32, i32) {
    %c0_i32 = arith.constant 0 : i32
    %c0_i32_0 = arith.constant 0 : i32
    %c0_i32_1 = arith.constant 0 : i32
    return %c0_i32, %c0_i32_0 : i32, i32
  }
  func.func @transform_2(%arg0: i32, %arg1: i32) -> (i32, i32) {
    %c0_i32 = arith.constant 0 : i32
    %c0_i32_0 = arith.constant 0 : i32
    %c0_i32_1 = arith.constant 0 : i32
    return %c0_i32, %c0_i32_0 : i32, i32
  }
  func.func @transform_3(%arg0: i32, %arg1: i32) -> (i32, i32) {
    %c0_i32 = arith.constant 0 : i32
    %c0_i32_0 = arith.constant 0 : i32
    %c0_i32_1 = arith.constant 0 : i32
    return %c0_i32, %c0_i32_0 : i32, i32
  }
  func.func @transform_4(%arg0: i32, %arg1: i32) -> (i32, i32) {
    %c0_i32 = arith.constant 0 : i32
    %c0_i32_0 = arith.constant 0 : i32
    %c0_i32_1 = arith.constant 0 : i32
    return %c0_i32, %c0_i32_0 : i32, i32
  }
  func.func @transform_5(%arg0: i32, %arg1: i32) -> (i32, i32) {
    %c0_i32 = arith.constant 0 : i32
    %c0_i32_0 = arith.constant 0 : i32
    %c0_i32_1 = arith.constant 0 : i32
    return %c0_i32, %c0_i32_0 : i32, i32
  }
  func.func @transform_6(%arg0: i32, %arg1: i32) -> (i32, i32, i32) {
    %c0_i32 = arith.constant 0 : i32
    %c0_i32_0 = arith.constant 0 : i32
    return %arg0, %c0_i32, %arg1 : i32, i32, i32
  }
}

</mosaic_0001>

<bundles_post_ra>
// kernel: mlp_res_forward.1
= control target key start
LH: loop header
LB: loop body
LE: loop exit
PB: predicated region body
PF: predicated region fallthrough
CT: control target
= control target key end

     0   :  { %11 = vsyncpa [#allocation3], 0  ;;  %s3202_s0 = inlined_call_operand.hbm [shape: f32[2,128,512], index: 0, kind: input, shape index: {}]   ;;  %s3203_s1 = inlined_call_operand.vmem [shape: f32[128,128], index: 1, kind: input, shape index: {}]   ;;  %s3204_s2 = inlined_call_operand.vmem [shape: f32[128,1], index: 2, kind: input, shape index: {}]   ;;  %s3205_s3 = inlined_call_operand.vmem [shape: f32[128,128], index: 3, kind: input, shape index: {}]   ;;  %s3206_s4 = inlined_call_operand.hbm [shape: f32[128,128], index: 4, kind: input, shape index: {}]   ;;  %s3207_s5 = inlined_call_operand.vmem [shape: f32[128,1], index: 5, kind: input, shape index: {}]   ;;  %s3208_s6 = inlined_call_operand.hbm [shape: f32[2,128,512], index: 6, kind: output, shape index: {}]  }
   0x1   :  { %13 = vsyncpa [#allocation3 + $0x1], 0 }
   0x2   :  { %14 = vsyncpa [#allocation6], 0 }
   0x3   :  { %15 = vsyncpa [#allocation4], 0 }
   0x4   :  { %17 = vsyncpa [#allocation4 + $0x1], 0  ;;  %s2430_s21 = smov 0   ;;  %s2432_s22 = smov 0  }
   0x5   :  { %s2434_s23 = smov 0   ;;  %s2436_s24 = smov 0  }
   0x6   :  { %s2438_s25 = smov 0   ;;  %s2440_s26 = smov 0  }
   0x7 LB: > { %s1880_s27 = sadd.s32 4294967295, %s2382_s26   ;;  %s1881_s28 = sadd.s32 4294967294, %s2382_s26   ;;  %s2382_s26 = sphi %s2440_s26, %s23_s26   ;;  %s2378_s25 = sphi %s2438_s25, %s3232_s25   ;;  %s2374_s24 = sphi %s2436_s24, %s3231_s24   ;;  %s2370_s23 = sphi %s2434_s23, %s3230_s23   ;;  %s2366_s22 = sphi %s2432_s22, %s3229_s22   ;;  %s2362_s21 = sphi %s2430_s21, %s3228_s21  }
   0x8   : > { %p57_p0 = scmp.ne.s32.totalorder %s2366_s22, %s2362_s21  ;;  %p2464_p1 = scmp.eq.s32.totalorder %s1880_s27, 0 }
   0x9   : > { %p2468_p2 = scmp.eq.s32.totalorder %s1880_s27, 1  ;;  %p194_p3 = scmp.eq.s32.totalorder %s1881_s28, 1 }
   0xa   : > { %s3213_s29 = scalar_select %p2464_p1, 1, 0 }
   0xb   : > { %s3214_s30 = scalar_select %p2468_p2, 1, 0 }
   0xc   : > { %p2474_p4 = por %p2464_p1, %p57_p0  ;;  %p1882_p5 = scmp.ge.s32.totalorder %s2382_s26, 1 }
   0xd   : > { %p2479_p6 = por %p194_p3, %p57_p0  ;;  %p201_p7 = scmp.lt.s32.totalorder %s2382_s26, 3 }
   0xe   : > { %s3215_s7 = scalar_select %p2474_p4, 1, 0 }
   0xf   : > { %s3216_s8 = scalar_select %p2479_p6, 1, 0 }
  0x10   : > { %p2484_p8 = pnand %p1882_p5, %p201_p7  ;;  %s2384_s10 = smov [#allocation5]  }
  0x11   : > { %s222_s11 = sshll.u32 %s2384_s10, 4  ;;  %s35_s13 = sadd.s32 1, %s2378_s25  ;;  %s223_s11 = int_to_ptr.vmem [resolvable:$true] %s222_s11 }
  0x12   : > { %s3217_s9 = scalar_select %p2484_p8, 1, 0 }
  0x13   : > { %p2163_p9 = pneg %p2484_p8  ;;  %s2238_s16 = scalar_lea.hbm %s3206_s4, 2048 }
  0x14   : > { %p2239_p12 = scmp.ne.s32.totalorder %s3206_s4, %s2238_s16  ;;  %p2245_p5 = scmp.lt.u32.totalorder %s2238_s16, %s3206_s4 }
  0x15   : > { %p2493_p11 = pnand %p2163_p9, %p2464_p1 }
  0x17   : > { %p2240_p13 = pneg %p2493_p11 }
  0x19   : > { %p2241_p0 = pnand %p2240_p13, %p2239_p12 }
  0x1b   : > { %p2242_p3 = pneg %p2241_p0 }
  0x1d   : > { %p2247_p7 = pnand %p2245_p5, %p2242_p3 }
  0x1f   : > { %2250 = shalt.err (!%p2247_p7)
}
  0x20   : > { %s2251_s27 = scalar_lea.vmem %s223_s11, 2048  ;;  %p2259_p1 = scmp.lt.s32.totalorder %s223_s11, %s223_s11 }
  0x21   : > { %p2252_p9 = scmp.ne.s32.totalorder %s223_s11, %s2251_s27  ;;  %p2260_p4 = scmp.lt.s32.totalorder %s2251_s27, %s2251_s27 }
  0x23   : > { %p2254_p10 = pnand %p2252_p9, %p2240_p13  ;;  %p2261_p8 = por %p2260_p4, %p2259_p1 }
  0x25   : > { %p2255_p6 = pneg %p2254_p10 }
  0x27   : > { %p2262_p2 = pnand %p2261_p8, %p2255_p6 }
  0x29   : > { %2265 = shalt.err (!%p2262_p2)
}
  0x2a   : > { %s2385_s28 = smov 128   ;;  %s2386_s10 = smov 8  }
  0x2b   : > { %2166 = dma.hbm_to_vmem [thread:$0]  (!%p2493_p11), %s3206_s4, 2048, %s223_s11, [#allocation6], %s2385_s28, %s2385_s28, %s2386_s10  }
  0x2c   : > { %p37_p1 = scmp.ge.s32.totalorder %s35_s13, 2  ;;  %s44_s16 = sadd.s32 1, %s2370_s23 }
  0x2d   : > { %p51_p2 = scmp.ne.s32.totalorder %s2370_s23, %s2366_s22  ;;  %p52_p4 = scmp.eq.s32.totalorder %s2382_s26, 0 }
  0x2e   : > { %s3234_s13 = smov (%p37_p1, %s35_s13), 0  ;;  %p3220_p8 = scmp.ne.s32.totalorder %s3214_s30, 0 }
  0x2f   : > { %p2520_p6 = por %p52_p4, %p51_p2  ;;  %s39_s12 = ssub.s32 %s2378_s25, %s3234_s13 }
  0x30   : > { %p2526_p10 = por %p3220_p8, %p51_p2  ;;  %p2176_p12 = scmp.lt.s32.totalorder %s2382_s26, 2 }
  0x31   : > { %p42_p11 = scmp.eq.s32.totalorder %s39_s12, 0  ;;  %s239_s11 = sand.u32 1, %s2370_s23  }
  0x32   : > { %s1885_s19 = sshll.u32 %s239_s11, 9  ;;  %s1897_s27 = sshll.u32 %s2378_s25, 13 }
  0x33   : > { %s2535_s20 = scalar_select %p42_p11, %s2370_s23, %s44_s16  }
  0x34   : > { %s2541_s14 = scalar_lea.hbm %s3202_s0, %s1897_s27  ;;  %s243_s30 = scalar_lea.vmem [#allocation2], %s1885_s19 }
  0x35   : > { %s252_s15 = sshll.u32 %s243_s30, 4  ;;  %p2547_p13 = pnand %p2176_p12, %p2520_p6  ;;  %s2543_s15 = int_to_ptr.vmem [resolvable:$true] %s252_s15 }
  0x36   : > { %s2551_s16 = scalar_lea.sflag [#allocation3], %s239_s11  ;;  %s2266_s28 = scalar_lea.hbm %s2541_s14, 8192 }
  0x37   : > { %p2267_p0 = scmp.ne.s32.totalorder %s2541_s14, %s2266_s28  ;;  %p2268_p3 = pneg %p2547_p13 }
  0x38   : > { %s2271_s17 = scalar_lea.hbm %s3202_s0, 16384  ;;  %p2272_p9 = scmp.lt.u32.totalorder %s2541_s14, %s3202_s0 }
  0x39   : > { %p2269_p5 = pnand %p2268_p3, %p2267_p0  ;;  %p2273_p1 = scmp.lt.u32.totalorder %s2271_s17, %s2266_s28 }
  0x3a   : > { %p2275_p4 = scmp.lt.u32.totalorder %s2266_s28, %s2541_s14 }
  0x3b   : > { %p2270_p7 = pneg %p2269_p5  ;;  %p2274_p2 = por %p2273_p1, %p2272_p9 }
  0x3d   : > { %p2276_p6 = por %p2275_p4, %p2274_p2 }
  0x3f   : > { %p2277_p8 = pnand %p2276_p6, %p2270_p7 }
  0x41   : > { %2280 = shalt.err (!%p2277_p8)
}
  0x42   : > { %s2281_s11 = scalar_lea.vmem %s2543_s15, 8192  ;;  %s2387_s19 = smov [#allocation2]  }
  0x43   : > { %p2282_p12 = scmp.ne.s32.totalorder %s2543_s15, %s2281_s11  ;;  %s2286_s27 = sshll.u32 %s2387_s19, 4  ;;  %s2287_s27 = int_to_ptr.vmem [resolvable:$false] %s2286_s27 }
  0x44   : > { %s2288_s10 = scalar_lea.vmem %s2287_s27, 16384  ;;  %p2289_p5 = scmp.lt.s32.totalorder %s2543_s15, %s2287_s27 }
  0x45   : > { %p2284_p11 = pnand %p2282_p12, %p2268_p3  ;;  %p2290_p9 = scmp.lt.s32.totalorder %s2288_s10, %s2281_s11 }
  0x47   : > { %p2285_p0 = pneg %p2284_p11  ;;  %p2291_p1 = por %p2290_p9, %p2289_p5 }
  0x49   : > { %p2292_p2 = pnand %p2291_p1, %p2285_p0 }
  0x4b   : > { %2295 = shalt.err (!%p2292_p2)
}
  0x4c   : > { %s2388_s28 = smov 512   ;;  %s2389_s17 = smov 32  }
  0x4d   : > { %2170 = dma.hbm_to_vmem [thread:$0]  (!%p2547_p13), %s2541_s14, 8192, %s2543_s15, %s2551_s16, %s2388_s28, %s2388_s28, %s2389_s17  }
  0x4e   : > { %p3223_p3 = scmp.ne.s32.totalorder %s3217_s9, 0 }
  0x4f   : > { %s2582_s30 = sand.u32 (!%p3223_p3), 1, %s2366_s22   ;;  %p3224_p7 = scmp.ne.s32.totalorder (!%p3223_p3), %s3215_s7, 0 }
  0x50   : > { %264 = sbr.rel (%p3223_p3) target bundleno = 765 (0x2fd), region = 44  ;;  %s1889_s11 = sshll.u32 (!%p3223_p3), %s2582_s30, 9 }
  0x51   : > { %s267_s19 = scalar_lea.sflag (!%p3223_p3), [#allocation3], %s2582_s30  ;;  %s2588_s27 = scalar_lea.vmem (!%p3223_p3), [#allocation2], %s1889_s11 }
  0x57   : > { %2349 = dma.done.wait (%p3224_p7), %s267_s19, 8192  }
  0x58   : > { %2351 = vsyncadd (%p3224_p7), %s267_s19, 4294959104  ;;  %p3225_p13 = scmp.ne.s32.totalorder %s3213_s29, 0 }
  0x5a   : > { %2353 = dma.done.wait (%p3225_p13), [#allocation6], 2048  }
  0x5b   : > { %2355 = vsyncadd (%p3225_p13), [#allocation6], 4294965248  ;;  %v2390_v0 = vmov 0.0   ;;  %v2391_v1 = vmov 0   ;;  %v306_v2 = vld [vmem:[%s2588_s27 + $0x8] sm:$0xff]  ;;  %v308_v4 = vld [vmem:[%s2588_s27 + $0x18] sm:$0xff] }
  0x5c   : > { %561 = vmatprep.mubr.f32.mxu0 %v2390_v0  ;;  %722 = vmatprep.mubr.f32.mxu1 %v2390_v0  ;;  %v310_v3 = vld [vmem:[%s2588_s27 + $0x28] sm:$0xff]  ;;  %v312_v6 = vld [vmem:[%s2588_s27 + $0x38] sm:$0xff]  ;;  %v305_v7 = vld [vmem:[%s2588_s27] sm:$0xff]  ;;  %s3080_s28 = scalar_lea.vmem [#allocation7], %s1889_s11  ;;  %s1898_s11 = sshll.u32 %s2374_s24, 13 }
  0x5d   : > { %2236 = vset.pattern.permute.xlu0 %v2391_v1  ;;  %2237 = vset.pattern.permute.xlu1 %v2391_v1  ;;  %v2603_v5 = vpack.c.bf16 %v310_v3, %v306_v2  ;;  %v309_v8 = vld [vmem:[%s2588_s27 + $0x20] sm:$0xff]  ;;  %v2608_v9 = vpack.c.bf16 %v312_v6, %v308_v4  ;;  %v307_v11 = vld [vmem:[%s2588_s27 + $0x10] sm:$0xff]  ;;  %v314_v13 = vld [vmem:[%s2588_s27 + $0x48] sm:$0xff]  ;;  %s1783_s17 = sshll.u32 %s3080_s28, 4  ;;  %s3147_s24 = scalar_lea.hbm %s3208_s6, %s1898_s11  ;;  %s3149_s17 = int_to_ptr.vmem [resolvable:$true] %s1783_s17 }
  0x5e   : > { %v2610_v10 = vpack.c.bf16 %v309_v8, %v305_v7  ;;  %v311_v12 = vld [vmem:[%s2588_s27 + $0x30] sm:$0xff]  ;;  %v318_v15 = vld [vmem:[%s2588_s27 + $0x68] sm:$0xff]  ;;  %v316_v16 = vld [vmem:[%s2588_s27 + $0x58] sm:$0xff]  ;;  %s1768_s29 = scalar_lea.sflag [#allocation4], %s2582_s30  ;;  %s2296_s7 = scalar_lea.vmem %s3149_s17, 8192 }
  0x5f   : > { %1900 = vmatprep.subr.bf16.mxu0 %v2603_v5  ;;  %v2616_v14 = vpack.c.bf16 %v311_v12, %v307_v11  ;;  %v320_v17 = vld [vmem:[%s2588_s27 + $0x78] sm:$0xff]  ;;  %1932 = vmatprep.subr.bf16.mxu1 %v2608_v9  ;;  %v2623_v18 = vpack.c.bf16 %v318_v15, %v314_v13  ;;  %v313_v20 = vld [vmem:[%s2588_s27 + $0x40] sm:$0xff]  ;;  %v315_v22 = vld [vmem:[%s2588_s27 + $0x50] sm:$0xff]  ;;  %p2297_p4 = scmp.ne.s32.totalorder %s3149_s17, %s2296_s7  ;;  %s2392_s9 = smov [#allocation7]  }
  0x60   : > { %1902 = vmatpush1.bf16.msra.mxu0 %v2610_v10  ;;  %v2625_v19 = vpack.c.bf16 %v320_v17, %v316_v16  ;;  %v317_v21 = vld [vmem:[%s2588_s27 + $0x60] sm:$0xff]  ;;  %v319_v24 = vld [vmem:[%s2588_s27 + $0x70] sm:$0xff]  ;;  %v322_v25 = vld [vmem:[%s2588_s27 + $0x88] sm:$0xff]  ;;  %s2300_s14 = sshll.u32 %s2392_s9, 4  ;;  %s2301_s14 = int_to_ptr.vmem [resolvable:$false] %s2300_s14 }
  0x61   : > { %1934 = vmatpush1.bf16.msra.mxu1 %v2616_v14  ;;  %v2631_v23 = vpack.c.bf16 %v317_v21, %v313_v20  ;;  %v326_v26 = vld [vmem:[%s2588_s27 + $0xa8] sm:$0xff]  ;;  %1904 = vmatprep.subr.bf16.mxu0 %v2623_v18  ;;  %v2638_v27 = vpack.c.bf16 %v319_v24, %v315_v22  ;;  %v324_v29 = vld [vmem:[%s2588_s27 + $0x98] sm:$0xff]  ;;  %v321_v31 = vld [vmem:[%s2588_s27 + $0x80] sm:$0xff]  ;;  %p2298_p6 = pnand %p2297_p4, %p2526_p10  ;;  %s2302_s15 = scalar_lea.vmem %s2301_s14, 16384 }
  0x62   : > { %1936 = vmatprep.subr.bf16.mxu1 %v2625_v19  ;;  %v2640_v28 = vpack.c.bf16 %v326_v26, %v322_v25  ;;  %v328_v30 = vld [vmem:[%s2588_s27 + $0xb8] sm:$0xff]  ;;  %v325_v33 = vld [vmem:[%s2588_s27 + $0xa0] sm:$0xff]  ;;  %v323_v34 = vld [vmem:[%s2588_s27 + $0x90] sm:$0xff]  ;;  %p2303_p12 = scmp.lt.s32.totalorder %s3149_s17, %s2301_s14  ;;  %p2304_p11 = scmp.lt.s32.totalorder %s2302_s15, %s2296_s7 }
  0x63   : > { %v2645_v32 = vpack.c.bf16 %v328_v30, %v324_v29  ;;  %v327_v35 = vld [vmem:[%s2588_s27 + $0xb0] sm:$0xff]  ;;  %v2651_v36 = vpack.c.bf16 %v325_v33, %v321_v31  ;;  %v330_v37 = vld [vmem:[%s2588_s27 + $0xc8] sm:$0xff]  ;;  %v332_v39 = vld [vmem:[%s2588_s27 + $0xd8] sm:$0xff]  ;;  %p2299_p8 = pneg %p2298_p6 }
  0x64   : > { %1906 = vmatpush1.bf16.msra.mxu0 %v2631_v23  ;;  %v334_v38 = vld [vmem:[%s2588_s27 + $0xe8] sm:$0xff]  ;;  %v2658_v40 = vpack.c.bf16 %v327_v35, %v323_v34  ;;  %v336_v42 = vld [vmem:[%s2588_s27 + $0xf8] sm:$0xff]  ;;  %v329_v43 = vld [vmem:[%s2588_s27 + $0xc0] sm:$0xff]  ;;  %p2305_p0 = por %p2304_p11, %p2303_p12 }
  0x65   : > { %1938 = vmatpush1.bf16.msra.mxu1 %v2638_v27  ;;  %1908 = vmatprep.subr.bf16.mxu0 %v2640_v28  ;;  %v2660_v41 = vpack.c.bf16 %v334_v38, %v330_v37  ;;  %v333_v44 = vld [vmem:[%s2588_s27 + $0xe0] sm:$0xff]  ;;  %v2666_v45 = vpack.c.bf16 %v336_v42, %v332_v39  ;;  %v331_v46 = vld [vmem:[%s2588_s27 + $0xd0] sm:$0xff]  ;;  %v338_v48 = vld [vmem:[%s2588_s27 + $0x108] sm:$0xff] }
  0x66   : > { %1940 = vmatprep.subr.bf16.mxu1 %v2645_v32  ;;  %v335_v47 = vld [vmem:[%s2588_s27 + $0xf0] sm:$0xff]  ;;  %v342_v49 = vld [vmem:[%s2588_s27 + $0x128] sm:$0xff]  ;;  %v340_v50 = vld [vmem:[%s2588_s27 + $0x118] sm:$0xff]  ;;  %v2675_v52 = vpack.c.bf16 %v333_v44, %v329_v43  ;;  %p2306_p5 = pnand %p2305_p0, %p2299_p8 }
  0x67   : > { %v344_v51 = vld [vmem:[%s2588_s27 + $0x138] sm:$0xff]  ;;  %v2679_v53 = vpack.c.bf16 %v335_v47, %v331_v46  ;;  %v2681_v54 = vpack.c.bf16 %v342_v49, %v338_v48  ;;  %v337_v55 = vld [vmem:[%s2588_s27 + $0x100] sm:$0xff]  ;;  %v339_v57 = vld [vmem:[%s2588_s27 + $0x110] sm:$0xff] }
  0x68   : > { %1910 = vmatpush1.bf16.msra.mxu0 %v2651_v36  ;;  %v341_v56 = vld [vmem:[%s2588_s27 + $0x120] sm:$0xff]  ;;  %v2687_v58 = vpack.c.bf16 %v344_v51, %v340_v50  ;;  %v343_v59 = vld [vmem:[%s2588_s27 + $0x130] sm:$0xff]  ;;  %v346_v60 = vld [vmem:[%s2588_s27 + $0x148] sm:$0xff] }
  0x69   : > { %1942 = vmatpush1.bf16.msra.mxu1 %v2658_v40  ;;  %1912 = vmatprep.subr.bf16.mxu0 %v2660_v41  ;;  %v350_v61 = vld [vmem:[%s2588_s27 + $0x168] sm:$0xff]  ;;  %v348_v62 = vld [vmem:[%s2588_s27 + $0x158] sm:$0xff]  ;;  %v2695_v1 = vpack.c.bf16 %v341_v56, %v337_v55  ;;  %v2699_v2 = vpack.c.bf16 %v343_v59, %v339_v57  ;;  %v345_v4 = vld [vmem:[%s2588_s27 + $0x140] sm:$0xff] }
  0x6a   : > { %1944 = vmatprep.subr.bf16.mxu1 %v2666_v45  ;;  %v352_v63 = vld [vmem:[%s2588_s27 + $0x178] sm:$0xff]  ;;  %v2701_v3 = vpack.c.bf16 %v350_v61, %v346_v60  ;;  %v349_v6 = vld [vmem:[%s2588_s27 + $0x160] sm:$0xff]  ;;  %v347_v7 = vld [vmem:[%s2588_s27 + $0x150] sm:$0xff] }
  0x6b   : > { %v2707_v8 = vpack.c.bf16 %v352_v63, %v348_v62  ;;  %v351_v11 = vld [vmem:[%s2588_s27 + $0x170] sm:$0xff]  ;;  %v354_v12 = vld [vmem:[%s2588_s27 + $0x188] sm:$0xff]  ;;  %v356_v15 = vld [vmem:[%s2588_s27 + $0x198] sm:$0xff]  ;;  %v2715_v17 = vpack.c.bf16 %v349_v6, %v345_v4 }
  0x6c   : > { %1914 = vmatpush1.bf16.msra.mxu0 %v2675_v52  ;;  %v358_v13 = vld [vmem:[%s2588_s27 + $0x1a8] sm:$0xff]  ;;  %v360_v16 = vld [vmem:[%s2588_s27 + $0x1b8] sm:$0xff]  ;;  %v2719_v20 = vpack.c.bf16 %v351_v11, %v347_v7  ;;  %v353_v22 = vld [vmem:[%s2588_s27 + $0x180] sm:$0xff] }
  0x6d   : > { %1946 = vmatpush1.bf16.msra.mxu1 %v2679_v53  ;;  %1916 = vmatprep.subr.bf16.mxu0 %v2681_v54  ;;  %v2721_v21 = vpack.c.bf16 %v358_v13, %v354_v12  ;;  %v357_v24 = vld [vmem:[%s2588_s27 + $0x1a0] sm:$0xff]  ;;  %v355_v25 = vld [vmem:[%s2588_s27 + $0x190] sm:$0xff]  ;;  %v2727_v26 = vpack.c.bf16 %v360_v16, %v356_v15  ;;  %v362_v30 = vld [vmem:[%s2588_s27 + $0x1c8] sm:$0xff] }
  0x6e   : > { %1948 = vmatprep.subr.bf16.mxu1 %v2687_v58  ;;  %v359_v29 = vld [vmem:[%s2588_s27 + $0x1b0] sm:$0xff]  ;;  %v366_v31 = vld [vmem:[%s2588_s27 + $0x1e8] sm:$0xff]  ;;  %v364_v33 = vld [vmem:[%s2588_s27 + $0x1d8] sm:$0xff]  ;;  %v2738_v37 = vpack.c.bf16 %v357_v24, %v353_v22 }
  0x6f   : > { %v368_v34 = vld [vmem:[%s2588_s27 + $0x1f8] sm:$0xff]  ;;  %v401_v35 = vld [vmem:[%s3204_s2] sm:$0xff]  ;;  %v2743_v39 = vpack.c.bf16 %v359_v29, %v355_v25  ;;  %v2745_v42 = vpack.c.bf16 %v366_v31, %v362_v30  ;;  %v402_v44 = vld [vmem:[%s3204_s2 + $0x8] sm:$0xff] }
  0x70   : > { %1918 = vmatpush1.bf16.msra.mxu0 %v2695_v1  ;;  %v361_v38 = vld [vmem:[%s2588_s27 + $0x1c0] sm:$0xff]  ;;  %419 = vperm.xlu0 %2236, %v401_v35   ;;  %v403_v46 = vld [vmem:[%s3204_s2 + $0x10] sm:$0xff]  ;;  %v2755_v47 = vpack.c.bf16 %v368_v34, %v364_v33  ;;  %v404_v50 = vld [vmem:[%s3204_s2 + $0x18] sm:$0xff] }
  0x71   : > { %1950 = vmatpush1.bf16.msra.mxu1 %v2699_v2  ;;  %1920 = vmatprep.subr.bf16.mxu0 %v2701_v3  ;;  %v365_v43 = vld [vmem:[%s2588_s27 + $0x1e0] sm:$0xff]  ;;  %v363_v48 = vld [vmem:[%s2588_s27 + $0x1d0] sm:$0xff]  ;;  %v406_v57 = vld [vmem:[%s3204_s2 + $0x28] sm:$0xff] }
  0x72   : > { %1952 = vmatprep.subr.bf16.mxu1 %v2707_v8  ;;  %v367_v49 = vld [vmem:[%s2588_s27 + $0x1f0] sm:$0xff]  ;;  %429 = vperm.xlu1 %2237, %v403_v46   ;;  %v2763_v51 = vpack.c.bf16 %v365_v43, %v361_v38  ;;  %v405_v56 = vld [vmem:[%s3204_s2 + $0x20] sm:$0xff]  ;;  %v408_v61 = vld [vmem:[%s3204_s2 + $0x38] sm:$0xff] }
  0x73   : > { %v2767_v55 = vpack.c.bf16 %v367_v49, %v363_v48  ;;  %v385_v59 = vld [vmem:[%s3203_s1] sm:$0xff]  ;;  %v407_v60 = vld [vmem:[%s3204_s2 + $0x30] sm:$0xff]  ;;  %v386_v62 = vld [vmem:[%s3203_s1 + $0x8] sm:$0xff] }
  0x74   : > { %1922 = vmatpush1.bf16.msra.mxu0 %v2715_v17  ;;  %424 = vperm.xlu0 %2236, %v402_v44   ;;  %v409_v63 = vld [vmem:[%s3204_s2 + $0x40] sm:$0xff]  ;;  %v410_v4 = vld [vmem:[%s3204_s2 + $0x48] sm:$0xff]  ;;  %v387_v6 = vld [vmem:[%s3203_s1 + $0x10] sm:$0xff] }
  0x75   : > { %1954 = vmatpush1.bf16.msra.mxu1 %v2719_v20  ;;  %1924 = vmatprep.subr.bf16.mxu0 %v2721_v21  ;;  %v411_v7 = vld [vmem:[%s3204_s2 + $0x50] sm:$0xff]  ;;  %v412_v11 = vld [vmem:[%s3204_s2 + $0x58] sm:$0xff]  ;;  %v413_v13 = vld [vmem:[%s3204_s2 + $0x60] sm:$0xff] }
  0x76   : > { %1956 = vmatprep.subr.bf16.mxu1 %v2727_v26  ;;  %434 = vperm.xlu1 %2237, %v404_v50   ;;  %v388_v12 = vld [vmem:[%s3203_s1 + $0x18] sm:$0xff]  ;;  %v414_v15 = vld [vmem:[%s3204_s2 + $0x68] sm:$0xff]  ;;  %v389_v16 = vld [vmem:[%s3203_s1 + $0x20] sm:$0xff] }
  0x77   : > { %v415_v22 = vld [vmem:[%s3204_s2 + $0x70] sm:$0xff]  ;;  %v416_v24 = vld [vmem:[%s3204_s2 + $0x78] sm:$0xff]  ;;  %v390_v25 = vld [vmem:[%s3203_s1 + $0x28] sm:$0xff] }
  0x78   : > { %1926 = vmatpush1.bf16.msra.mxu0 %v2738_v37  ;;  %439 = vperm.xlu0 %2236, %v405_v56   ;;  %v1543_v29 = vld [vmem:[%s3207_s5] sm:$0xff]  ;;  %v1544_v30 = vld [vmem:[%s3207_s5 + $0x8] sm:$0xff]  ;;  %v391_v31 = vld [vmem:[%s3203_s1 + $0x30] sm:$0xff] }
  0x79   : > { %1958 = vmatpush1.bf16.msra.mxu1 %v2743_v39  ;;  %1928 = vmatprep.subr.bf16.mxu0 %v2745_v42  ;;  %v1545_v33 = vld [vmem:[%s3207_s5 + $0x10] sm:$0xff]  ;;  %v1546_v34 = vld [vmem:[%s3207_s5 + $0x18] sm:$0xff]  ;;  %v1547_v38 = vld [vmem:[%s3207_s5 + $0x20] sm:$0xff] }
  0x7a   : > { %1960 = vmatprep.subr.bf16.mxu1 %v2755_v47  ;;  %444 = vperm.xlu1 %2237, %v406_v57   ;;  %v392_v35 = vld [vmem:[%s3203_s1 + $0x38] sm:$0xff]  ;;  %v1548_v43 = vld [vmem:[%s3207_s5 + $0x28] sm:$0xff]  ;;  %v393_v44 = vld [vmem:[%s3203_s1 + $0x40] sm:$0xff] }
  0x7b   : > { %v1549_v46 = vld [vmem:[%s3207_s5 + $0x30] sm:$0xff]  ;;  %v1550_v48 = vld [vmem:[%s3207_s5 + $0x38] sm:$0xff]  ;;  %v394_v49 = vld [vmem:[%s3203_s1 + $0x48] sm:$0xff] }
  0x7c   : > { %1930 = vmatpush1.bf16.msra.mxu0 %v2763_v51  ;;  %449 = vperm.xlu0 %2236, %v407_v60   ;;  %v1551_v50 = vld [vmem:[%s3207_s5 + $0x40] sm:$0xff]  ;;  %v1552_v56 = vld [vmem:[%s3207_s5 + $0x48] sm:$0xff]  ;;  %v395_v57 = vld [vmem:[%s3203_s1 + $0x50] sm:$0xff] }
  0x7d   : > { %1962 = vmatpush1.bf16.msra.mxu1 %v2767_v55  ;;  %v1554_v60 = vld [vmem:[%s3207_s5 + $0x58] sm:$0xff] }
  0x7e   : > { %454 = vperm.xlu1 %2237, %v408_v61   ;;  %v396_v61 = vld [vmem:[%s3203_s1 + $0x58] sm:$0xff] }
  0x7f   : > { %562 = vmatmul.mubr.f32.vlgmr.msra.gmra.mrb[0].mxu0 %v385_v59 }
  0x80   : > { %723 = vmatmul.mubr.f32.vlgmr.msra.gmra.mrb[0].mxu1 %v385_v59  ;;  %567 = vmatprep.mubr.f32.mxu0 %v2390_v0  ;;  %v1553_v59 = vld [vmem:[%s3207_s5 + $0x50] sm:$0xff] }
  0x81   : > { %728 = vmatprep.mubr.f32.mxu1 %v2390_v0  ;;  %459 = vperm.xlu0 %2236, %v409_v63   ;;  %v1556_v63 = vld [vmem:[%s3207_s5 + $0x68] sm:$0xff] }
  0x82   : > { %464 = vperm.xlu1 %2237, %v410_v4   ;;  %v397_v4 = vld [vmem:[%s3203_s1 + $0x60] sm:$0xff] }
  0x83   : > { %568 = vmatmul.mubr.f32.gmra.mrb[2].mxu0 %v386_v62 }
  0x84   : > { %729 = vmatmul.mubr.f32.gmra.mrb[2].mxu1 %v386_v62  ;;  %573 = vmatprep.mubr.f32.mxu0 %v2390_v0  ;;  %v1555_v62 = vld [vmem:[%s3207_s5 + $0x60] sm:$0xff] }
  0x85   : > { %734 = vmatprep.mubr.f32.mxu1 %v2390_v0  ;;  %469 = vperm.xlu0 %2236, %v411_v7   ;;  %v1558_v7 = vld [vmem:[%s3207_s5 + $0x78] sm:$0xff] }
  0x86   : > { %474 = vperm.xlu1 %2237, %v412_v11   ;;  %v398_v11 = vld [vmem:[%s3203_s1 + $0x68] sm:$0xff] }
  0x87   : > { %574 = vmatmul.mubr.f32.gmra.mrb[4].mxu0 %v387_v6 }
  0x88   : > { %735 = vmatmul.mubr.f32.gmra.mrb[4].mxu1 %v387_v6  ;;  %579 = vmatprep.mubr.f32.mxu0 %v2390_v0  ;;  %v1557_v6 = vld [vmem:[%s3207_s5 + $0x70] sm:$0xff] }
  0x89   : > { %740 = vmatprep.mubr.f32.mxu1 %v2390_v0  ;;  %479 = vperm.xlu0 %2236, %v413_v13   ;;  %v400_v13 = vld [vmem:[%s3203_s1 + $0x78] sm:$0xff] }
  0x8a   : > { %484 = vperm.xlu1 %2237, %v414_v15  }
  0x8b   : > { %580 = vmatmul.mubr.f32.gmra.mrb[6].mxu0 %v388_v12 }
  0x8c   : > { %741 = vmatmul.mubr.f32.gmra.mrb[6].mxu1 %v388_v12  ;;  %585 = vmatprep.mubr.f32.mxu0 %v2390_v0  ;;  %v399_v12 = vld [vmem:[%s3203_s1 + $0x70] sm:$0xff] }
  0x8d   : > { %746 = vmatprep.mubr.f32.mxu1 %v2390_v0  ;;  %489 = vperm.xlu0 %2236, %v415_v22  }
  0x8e   : > { %494 = vperm.xlu1 %2237, %v416_v24  }
  0x8f   : > { %586 = vmatmul.mubr.f32.gmra.mrb[8].mxu0 %v389_v16 }
  0x90   : > { %747 = vmatmul.mubr.f32.gmra.mrb[8].mxu1 %v389_v16  ;;  %591 = vmatprep.mubr.f32.mxu0 %v2390_v0 }
  0x91   : > { %752 = vmatprep.mubr.f32.mxu1 %v2390_v0  ;;  %1561 = vperm.xlu0 %2236, %v1543_v29  }
  0x92   : > { %1566 = vperm.xlu1 %2237, %v1544_v30  }
  0x93   : > { %592 = vmatmul.mubr.f32.gmra.mrb[10].mxu0 %v390_v25 }
  0x94   : > { %753 = vmatmul.mubr.f32.gmra.mrb[10].mxu1 %v390_v25  ;;  %597 = vmatprep.mubr.f32.mxu0 %v2390_v0 }
  0x95   : > { %758 = vmatprep.mubr.f32.mxu1 %v2390_v0  ;;  %1571 = vperm.xlu0 %2236, %v1545_v33  }
  0x96   : > { %1576 = vperm.xlu1 %2237, %v1546_v34  }
  0x97   : > { %598 = vmatmul.mubr.f32.gmra.mrb[12].mxu0 %v391_v31 }
  0x98   : > { %759 = vmatmul.mubr.f32.gmra.mrb[12].mxu1 %v391_v31  ;;  %603 = vmatprep.mubr.f32.mxu0 %v2390_v0 }
  0x99   : > { %764 = vmatprep.mubr.f32.mxu1 %v2390_v0  ;;  %1581 = vperm.xlu0 %2236, %v1547_v38  }
  0x9a   : > { %1586 = vperm.xlu1 %2237, %v1548_v43  }
  0x9b   : > { %604 = vmatmul.mubr.f32.gmra.mrb[14].mxu0 %v392_v35 }
  0x9c   : > { %765 = vmatmul.mubr.f32.gmra.mrb[14].mxu1 %v392_v35  ;;  %609 = vmatprep.mubr.f32.mxu0 %v2390_v0 }
  0x9d   : > { %770 = vmatprep.mubr.f32.mxu1 %v2390_v0  ;;  %1591 = vperm.xlu0 %2236, %v1549_v46  }
  0x9e   : > { %1596 = vperm.xlu1 %2237, %v1550_v48  }
  0x9f   : > { %610 = vmatmul.mubr.f32.gmra.mrb[16].mxu0 %v393_v44 }
  0xa0   : > { %771 = vmatmul.mubr.f32.gmra.mrb[16].mxu1 %v393_v44  ;;  %615 = vmatprep.mubr.f32.mxu0 %v2390_v0 }
  0xa1   : > { %776 = vmatprep.mubr.f32.mxu1 %v2390_v0  ;;  %1601 = vperm.xlu0 %2236, %v1551_v50  }
  0xa2   : > { %1606 = vperm.xlu1 %2237, %v1552_v56  }
  0xa3   : > { %616 = vmatmul.mubr.f32.gmra.mrb[18].mxu0 %v394_v49 }
  0xa4   : > { %777 = vmatmul.mubr.f32.gmra.mrb[18].mxu1 %v394_v49  ;;  %621 = vmatprep.mubr.f32.mxu0 %v2390_v0 }
  0xa5   : > { %782 = vmatprep.mubr.f32.mxu1 %v2390_v0  ;;  %1611 = vperm.xlu0 %2236, %v1553_v59  }
  0xa6   : > { %1616 = vperm.xlu1 %2237, %v1554_v60  }
  0xa7   : > { %622 = vmatmul.mubr.f32.gmra.mrb[20].mxu0 %v395_v57 }
  0xa8   : > { %783 = vmatmul.mubr.f32.gmra.mrb[20].mxu1 %v395_v57  ;;  %627 = vmatprep.mubr.f32.mxu0 %v2390_v0 }
  0xa9   : > { %788 = vmatprep.mubr.f32.mxu1 %v2390_v0  ;;  %1621 = vperm.xlu0 %2236, %v1555_v62  }
  0xaa   : > { %1626 = vperm.xlu1 %2237, %v1556_v63  }
  0xab   : > { %628 = vmatmul.mubr.f32.gmra.mrb[22].mxu0 %v396_v61 }
  0xac   : > { %789 = vmatmul.mubr.f32.gmra.mrb[22].mxu1 %v396_v61  ;;  %633 = vmatprep.mubr.f32.mxu0 %v2390_v0 }
  0xad   : > { %794 = vmatprep.mubr.f32.mxu1 %v2390_v0  ;;  %1631 = vperm.xlu0 %2236, %v1557_v6  }
  0xae   : > { %1636 = vperm.xlu1 %2237, %v1558_v7  }
  0xaf   : > { %634 = vmatmul.mubr.f32.gmra.mrb[24].mxu0 %v397_v4 }
  0xb0   : > { %795 = vmatmul.mubr.f32.gmra.mrb[24].mxu1 %v397_v4  ;;  %639 = vmatprep.mubr.f32.mxu0 %v2390_v0 }
  0xb1   : > { %800 = vmatprep.mubr.f32.mxu1 %v2390_v0 }
  0xb3   : > { %640 = vmatmul.mubr.f32.gmra.mrb[26].mxu0 %v398_v11 }
  0xb4   : > { %801 = vmatmul.mubr.f32.gmra.mrb[26].mxu1 %v398_v11  ;;  %645 = vmatprep.mubr.f32.mxu0 %v2390_v0 }
  0xb5   : > { %806 = vmatprep.mubr.f32.mxu1 %v2390_v0 }
  0xb7   : > { %646 = vmatmul.mubr.f32.gmra.mrb[28].mxu0 %v399_v12 }
  0xb8   : > { %807 = vmatmul.mubr.f32.gmra.mrb[28].mxu1 %v399_v12  ;;  %651 = vmatprep.mubr.f32.mxu0 %v2390_v0 }
  0xb9   : > { %812 = vmatprep.mubr.f32.mxu1 %v2390_v0 }
  0xbb   : > { %652 = vmatmul.mubr.f32.gmra.mrb[30].mxu0 %v400_v13 }
  0xbc   : > { %813 = vmatmul.mubr.f32.gmra.mrb[30].mxu1 %v400_v13  ;;  %963 = vmatprep.mubr.f32.mxu0 %v2390_v0 }
  0xbd   : > { %1124 = vmatprep.mubr.f32.mxu1 %v2390_v0 }
  0xef   : > { %v420_v15 = vpop.permute.xlu0 %419 }
  0xf1   : > { %v430_v46 = vpop.permute.xlu1 %429 }
  0xf3   : > { %v425_v30 = vpop.permute.xlu0 %424 }
 0x152   : > { %v563_v16 = vpop.f32.mrb[0].mxu0 }
 0x153   : > { %v724_v22 = vpop.f32.mrb[0].mxu1  ;;  %v565_v24 = vpop.f32.mrb[1].mxu0  ;;  %v564_v29 = vadd.f32 %v563_v16, %v420_v15 }
 0x154   : > { %v726_v25 = vpop.f32.mrb[1].mxu1  ;;  %v725_v31 = vadd.f32 %v724_v22, %v420_v15  ;;  %v566_v33 = vadd.f32 %v565_v24, %v420_v15 }
 0x155   : > { %v727_v35 = vadd.f32 %v726_v25, %v420_v15  ;;  %v819_v56 = vmax.f32 %v564_v29, 0.0 }
 0x156   : > { %v569_v34 = vpop.f32.mrb[2].mxu0  ;;  %v821_v60 = vmax.f32 %v725_v31, 0.0  ;;  %v820_v61 = vmax.f32 %v566_v33, 0.0 }
 0x157   : > { %v570_v38 = vadd.f32 %v569_v34, %v425_v30  ;;  %v730_v43 = vpop.f32.mrb[2].mxu1  ;;  %v571_v44 = vpop.f32.mrb[3].mxu0  ;;  %v822_v6 = vmax.f32 %v727_v35, 0.0 }
 0x158   : > { %v731_v48 = vadd.f32 %v730_v43, %v425_v30  ;;  %v572_v49 = vadd.f32 %v571_v44, %v425_v30  ;;  %v732_v50 = vpop.f32.mrb[3].mxu1  ;;  %v435_v34 = vpop.permute.xlu1 %434 }
 0x159   : > { %v823_v57 = vmax.f32 %v570_v38, 0.0  ;;  %v733_v59 = vadd.f32 %v732_v50, %v425_v30 }
 0x15a   : > { %v825_v62 = vmax.f32 %v731_v48, 0.0  ;;  %v824_v63 = vmax.f32 %v572_v49, 0.0  ;;  %v575_v4 = vpop.f32.mrb[4].mxu0 }
 0x15b   : > { %v1965_v7 = vpack.c.bf16 %v823_v57, %v819_v56  ;;  %v826_v11 = vmax.f32 %v733_v59, 0.0  ;;  %v736_v12 = vpop.f32.mrb[4].mxu1  ;;  %v577_v13 = vpop.f32.mrb[5].mxu0  ;;  %v576_v25 = vadd.f32 %v575_v4, %v430_v46 }
 0x15c   : > { %v1997_v15 = vpack.c.bf16 %v825_v62, %v821_v60  ;;  %v1963_v16 = vpack.c.bf16 %v824_v63, %v820_v61  ;;  %v738_v22 = vpop.f32.mrb[5].mxu1  ;;  %v737_v43 = vadd.f32 %v736_v12, %v430_v46  ;;  %v578_v29 = vadd.f32 %v577_v13, %v430_v46  ;;  %v440_v13 = vpop.permute.xlu0 %439 }
 0x15d   : > { %v1995_v24 = vpack.c.bf16 %v826_v11, %v822_v6  ;;  %v739_v30 = vadd.f32 %v738_v22, %v430_v46  ;;  %v827_v50 = vmax.f32 %v576_v25, 0.0 }
 0x15e   : > { %v581_v38 = vpop.f32.mrb[6].mxu0  ;;  %1964 = vmatprep.subr.bf16.mxu0 %v1963_v16  ;;  %v829_v59 = vmax.f32 %v737_v43, 0.0  ;;  %v828_v60 = vmax.f32 %v578_v29, 0.0 }
 0x15f   : > { %v582_v31 = vadd.f32 %v581_v38, %v435_v34  ;;  %v742_v33 = vpop.f32.mrb[6].mxu1  ;;  %1996 = vmatprep.subr.bf16.mxu1 %v1995_v24  ;;  %v583_v44 = vpop.f32.mrb[7].mxu0  ;;  %1966 = vmatpush1.bf16.msra.mxu0 %v1965_v7  ;;  %v830_v4 = vmax.f32 %v739_v30, 0.0 }
 0x160   : > { %v743_v35 = vadd.f32 %v742_v33, %v435_v34  ;;  %v584_v48 = vadd.f32 %v583_v44, %v435_v34  ;;  %v744_v49 = vpop.f32.mrb[7].mxu1  ;;  %1998 = vmatpush1.bf16.msra.mxu1 %v1997_v15  ;;  %v445_v15 = vpop.permute.xlu1 %444 }
 0x161   : > { %v831_v56 = vmax.f32 %v582_v31, 0.0  ;;  %v745_v57 = vadd.f32 %v744_v49, %v435_v34 }
 0x162   : > { %v833_v61 = vmax.f32 %v743_v35, 0.0  ;;  %v832_v62 = vmax.f32 %v584_v48, 0.0  ;;  %v587_v63 = vpop.f32.mrb[8].mxu0 }
 0x163   : > { %v1969_v6 = vpack.c.bf16 %v831_v56, %v827_v50  ;;  %v834_v46 = vmax.f32 %v745_v57, 0.0  ;;  %v748_v11 = vpop.f32.mrb[8].mxu1  ;;  %v589_v12 = vpop.f32.mrb[9].mxu0  ;;  %v588_v38 = vadd.f32 %v587_v63, %v440_v13 }
 0x164   : > { %v2001_v16 = vpack.c.bf16 %v833_v61, %v829_v59  ;;  %v1967_v7 = vpack.c.bf16 %v832_v62, %v828_v60  ;;  %v750_v22 = vpop.f32.mrb[9].mxu1  ;;  %v749_v25 = vadd.f32 %v748_v11, %v440_v13  ;;  %v590_v31 = vadd.f32 %v589_v12, %v440_v13 }
 0x165   : > { %v1999_v24 = vpack.c.bf16 %v834_v46, %v830_v4  ;;  %v751_v43 = vadd.f32 %v750_v22, %v440_v13  ;;  %v835_v49 = vmax.f32 %v588_v38, 0.0  ;;  %v450_v13 = vpop.permute.xlu0 %449 }
 0x166   : > { %v593_v34 = vpop.f32.mrb[10].mxu0  ;;  %1968 = vmatprep.subr.bf16.mxu0 %v1967_v7  ;;  %v837_v57 = vmax.f32 %v749_v25, 0.0  ;;  %v836_v59 = vmax.f32 %v590_v31, 0.0 }
 0x167   : > { %v594_v29 = vadd.f32 %v593_v34, %v445_v15  ;;  %v754_v33 = vpop.f32.mrb[10].mxu1  ;;  %2000 = vmatprep.subr.bf16.mxu1 %v1999_v24  ;;  %v595_v30 = vpop.f32.mrb[11].mxu0  ;;  %1970 = vmatpush1.bf16.msra.mxu0 %v1969_v6  ;;  %v838_v63 = vmax.f32 %v751_v43, 0.0 }
 0x168   : > { %v755_v44 = vadd.f32 %v754_v33, %v445_v15  ;;  %v596_v35 = vadd.f32 %v595_v30, %v445_v15  ;;  %v756_v48 = vpop.f32.mrb[11].mxu1  ;;  %2002 = vmatpush1.bf16.msra.mxu1 %v2001_v16  ;;  %v455_v16 = vpop.permute.xlu1 %454 }
 0x169   : > { %v839_v50 = vmax.f32 %v594_v29, 0.0  ;;  %v757_v56 = vadd.f32 %v756_v48, %v445_v15 }
 0x16a   : > { %v841_v60 = vmax.f32 %v755_v44, 0.0  ;;  %v840_v61 = vmax.f32 %v596_v35, 0.0  ;;  %v599_v62 = vpop.f32.mrb[12].mxu0 }
 0x16b   : > { %v1973_v4 = vpack.c.bf16 %v839_v50, %v835_v49  ;;  %v842_v46 = vmax.f32 %v757_v56, 0.0  ;;  %v760_v11 = vpop.f32.mrb[12].mxu1  ;;  %v601_v12 = vpop.f32.mrb[13].mxu0  ;;  %v600_v34 = vadd.f32 %v599_v62, %v450_v13 }
 0x16c   : > { %v2005_v7 = vpack.c.bf16 %v841_v60, %v837_v57  ;;  %v1971_v6 = vpack.c.bf16 %v840_v61, %v836_v59  ;;  %v762_v22 = vpop.f32.mrb[13].mxu1  ;;  %v761_v38 = vadd.f32 %v760_v11, %v450_v13  ;;  %v602_v29 = vadd.f32 %v601_v12, %v450_v13 }
 0x16d   : > { %v2003_v24 = vpack.c.bf16 %v842_v46, %v838_v63  ;;  %v763_v25 = vadd.f32 %v762_v22, %v450_v13  ;;  %v843_v48 = vmax.f32 %v600_v34, 0.0  ;;  %v460_v13 = vpop.permute.xlu0 %459 }
 0x16e   : > { %v605_v15 = vpop.f32.mrb[14].mxu0  ;;  %1972 = vmatprep.subr.bf16.mxu0 %v1971_v6  ;;  %v845_v56 = vmax.f32 %v761_v38, 0.0  ;;  %v844_v57 = vmax.f32 %v602_v29, 0.0 }
 0x16f   : > { %v606_v31 = vadd.f32 %v605_v15, %v455_v16  ;;  %v766_v33 = vpop.f32.mrb[14].mxu1  ;;  %2004 = vmatprep.subr.bf16.mxu1 %v2003_v24  ;;  %v607_v43 = vpop.f32.mrb[15].mxu0  ;;  %1974 = vmatpush1.bf16.msra.mxu0 %v1973_v4  ;;  %v846_v62 = vmax.f32 %v763_v25, 0.0 }
 0x170   : > { %v767_v30 = vadd.f32 %v766_v33, %v455_v16  ;;  %v608_v44 = vadd.f32 %v607_v43, %v455_v16  ;;  %v768_v35 = vpop.f32.mrb[15].mxu1  ;;  %2006 = vmatpush1.bf16.msra.mxu1 %v2005_v7  ;;  %v465_v7 = vpop.permute.xlu1 %464 }
 0x171   : > { %v847_v49 = vmax.f32 %v606_v31, 0.0  ;;  %v769_v50 = vadd.f32 %v768_v35, %v455_v16 }
 0x172   : > { %v849_v59 = vmax.f32 %v767_v30, 0.0  ;;  %v848_v60 = vmax.f32 %v608_v44, 0.0  ;;  %v611_v61 = vpop.f32.mrb[16].mxu0 }
 0x173   : > { %v1977_v63 = vpack.c.bf16 %v847_v49, %v843_v48  ;;  %v850_v46 = vmax.f32 %v769_v50, 0.0  ;;  %v772_v11 = vpop.f32.mrb[16].mxu1  ;;  %v613_v12 = vpop.f32.mrb[17].mxu0  ;;  %v612_v15 = vadd.f32 %v611_v61, %v460_v13 }
 0x174   : > { %v2009_v6 = vpack.c.bf16 %v849_v59, %v845_v56  ;;  %v1975_v4 = vpack.c.bf16 %v848_v60, %v844_v57  ;;  %v774_v22 = vpop.f32.mrb[17].mxu1  ;;  %v773_v34 = vadd.f32 %v772_v11, %v460_v13  ;;  %v614_v31 = vadd.f32 %v613_v12, %v460_v13 }
 0x175   : > { %v2007_v24 = vpack.c.bf16 %v850_v46, %v846_v62  ;;  %v775_v38 = vadd.f32 %v774_v22, %v460_v13  ;;  %v851_v35 = vmax.f32 %v612_v15, 0.0  ;;  %v470_v13 = vpop.permute.xlu0 %469 }
 0x176   : > { %v617_v16 = vpop.f32.mrb[18].mxu0  ;;  %1976 = vmatprep.subr.bf16.mxu0 %v1975_v4  ;;  %v853_v50 = vmax.f32 %v773_v34, 0.0  ;;  %v852_v56 = vmax.f32 %v614_v31, 0.0 }
 0x177   : > { %v618_v29 = vadd.f32 %v617_v16, %v465_v7  ;;  %v778_v33 = vpop.f32.mrb[18].mxu1  ;;  %2008 = vmatprep.subr.bf16.mxu1 %v2007_v24  ;;  %v619_v25 = vpop.f32.mrb[19].mxu0  ;;  %1978 = vmatpush1.bf16.msra.mxu0 %v1977_v63  ;;  %v854_v61 = vmax.f32 %v775_v38, 0.0 }
 0x178   : > { %v779_v43 = vadd.f32 %v778_v33, %v465_v7  ;;  %v620_v30 = vadd.f32 %v619_v25, %v465_v7  ;;  %v780_v44 = vpop.f32.mrb[19].mxu1  ;;  %2010 = vmatpush1.bf16.msra.mxu1 %v2009_v6  ;;  %v475_v6 = vpop.permute.xlu1 %474 }
 0x179   : > { %v855_v48 = vmax.f32 %v618_v29, 0.0  ;;  %v781_v49 = vadd.f32 %v780_v44, %v465_v7 }
 0x17a   : > { %v857_v57 = vmax.f32 %v779_v43, 0.0  ;;  %v856_v59 = vmax.f32 %v620_v30, 0.0  ;;  %v623_v60 = vpop.f32.mrb[20].mxu0 }
 0x17b   : > { %v1981_v62 = vpack.c.bf16 %v855_v48, %v851_v35  ;;  %v858_v46 = vmax.f32 %v781_v49, 0.0  ;;  %v784_v11 = vpop.f32.mrb[20].mxu1  ;;  %v625_v12 = vpop.f32.mrb[21].mxu0  ;;  %v624_v16 = vadd.f32 %v623_v60, %v470_v13 }
 0x17c   : > { %v2013_v4 = vpack.c.bf16 %v857_v57, %v853_v50  ;;  %v1979_v63 = vpack.c.bf16 %v856_v59, %v852_v56  ;;  %v786_v22 = vpop.f32.mrb[21].mxu1  ;;  %v785_v15 = vadd.f32 %v784_v11, %v470_v13  ;;  %v626_v29 = vadd.f32 %v625_v12, %v470_v13 }
 0x17d   : > { %v2011_v24 = vpack.c.bf16 %v858_v46, %v854_v61  ;;  %v787_v34 = vadd.f32 %v786_v22, %v470_v13  ;;  %v859_v44 = vmax.f32 %v624_v16, 0.0  ;;  %v480_v13 = vpop.permute.xlu0 %479 }
 0x17e   : > { %v629_v7 = vpop.f32.mrb[22].mxu0  ;;  %1980 = vmatprep.subr.bf16.mxu0 %v1979_v63  ;;  %v861_v49 = vmax.f32 %v785_v15, 0.0  ;;  %v860_v50 = vmax.f32 %v626_v29, 0.0 }
 0x17f   : > { %v630_v31 = vadd.f32 %v629_v7, %v475_v6  ;;  %v790_v33 = vpop.f32.mrb[22].mxu1  ;;  %2012 = vmatprep.subr.bf16.mxu1 %v2011_v24  ;;  %v631_v38 = vpop.f32.mrb[23].mxu0  ;;  %1982 = vmatpush1.bf16.msra.mxu0 %v1981_v62  ;;  %v862_v60 = vmax.f32 %v787_v34, 0.0 }
 0x180   : > { %v791_v25 = vadd.f32 %v790_v33, %v475_v6  ;;  %v632_v43 = vadd.f32 %v631_v38, %v475_v6  ;;  %v792_v30 = vpop.f32.mrb[23].mxu1  ;;  %2014 = vmatpush1.bf16.msra.mxu1 %v2013_v4  ;;  %v485_v4 = vpop.permute.xlu1 %484 }
 0x181   : > { %v863_v35 = vmax.f32 %v630_v31, 0.0  ;;  %v793_v48 = vadd.f32 %v792_v30, %v475_v6 }
 0x182   : > { %v865_v56 = vmax.f32 %v791_v25, 0.0  ;;  %v864_v57 = vmax.f32 %v632_v43, 0.0  ;;  %v635_v59 = vpop.f32.mrb[24].mxu0 }
 0x183   : > { %v1985_v61 = vpack.c.bf16 %v863_v35, %v859_v44  ;;  %v866_v46 = vmax.f32 %v793_v48, 0.0  ;;  %v796_v11 = vpop.f32.mrb[24].mxu1  ;;  %v637_v12 = vpop.f32.mrb[25].mxu0  ;;  %v636_v7 = vadd.f32 %v635_v59, %v480_v13 }
 0x184   : > { %v2017_v63 = vpack.c.bf16 %v865_v56, %v861_v49  ;;  %v1983_v62 = vpack.c.bf16 %v864_v57, %v860_v50  ;;  %v798_v22 = vpop.f32.mrb[25].mxu1  ;;  %v797_v16 = vadd.f32 %v796_v11, %v480_v13  ;;  %v638_v31 = vadd.f32 %v637_v12, %v480_v13 }
 0x185   : > { %v2015_v24 = vpack.c.bf16 %v866_v46, %v862_v60  ;;  %v799_v15 = vadd.f32 %v798_v22, %v480_v13  ;;  %v867_v30 = vmax.f32 %v636_v7, 0.0  ;;  %v490_v13 = vpop.permute.xlu0 %489 }
 0x186   : > { %v641_v6 = vpop.f32.mrb[26].mxu0  ;;  %1984 = vmatprep.subr.bf16.mxu0 %v1983_v62  ;;  %v869_v48 = vmax.f32 %v797_v16, 0.0  ;;  %v868_v49 = vmax.f32 %v638_v31, 0.0 }
 0x187   : > { %v642_v29 = vadd.f32 %v641_v6, %v485_v4  ;;  %v802_v33 = vpop.f32.mrb[26].mxu1  ;;  %2016 = vmatprep.subr.bf16.mxu1 %v2015_v24  ;;  %v643_v34 = vpop.f32.mrb[27].mxu0  ;;  %1986 = vmatpush1.bf16.msra.mxu0 %v1985_v61  ;;  %v870_v59 = vmax.f32 %v799_v15, 0.0 }
 0x188   : > { %v803_v38 = vadd.f32 %v802_v33, %v485_v4  ;;  %v644_v25 = vadd.f32 %v643_v34, %v485_v4  ;;  %v804_v43 = vpop.f32.mrb[27].mxu1  ;;  %2018 = vmatpush1.bf16.msra.mxu1 %v2017_v63  ;;  %v495_v63 = vpop.permute.xlu1 %494 }
 0x189   : > { %v871_v44 = vmax.f32 %v642_v29, 0.0  ;;  %v805_v35 = vadd.f32 %v804_v43, %v485_v4 }
 0x18a   : > { %v873_v50 = vmax.f32 %v803_v38, 0.0  ;;  %v872_v56 = vmax.f32 %v644_v25, 0.0  ;;  %v647_v57 = vpop.f32.mrb[28].mxu0 }
 0x18b   : > { %v1989_v60 = vpack.c.bf16 %v871_v44, %v867_v30  ;;  %v874_v46 = vmax.f32 %v805_v35, 0.0  ;;  %v808_v11 = vpop.f32.mrb[28].mxu1  ;;  %v649_v12 = vpop.f32.mrb[29].mxu0  ;;  %v648_v6 = vadd.f32 %v647_v57, %v490_v13 }
 0x18c   : > { %v2021_v62 = vpack.c.bf16 %v873_v50, %v869_v48  ;;  %v1987_v61 = vpack.c.bf16 %v872_v56, %v868_v49  ;;  %v810_v22 = vpop.f32.mrb[29].mxu1  ;;  %v809_v7 = vadd.f32 %v808_v11, %v490_v13  ;;  %v650_v29 = vadd.f32 %v649_v12, %v490_v13 }
 0x18d   : > { %v2019_v24 = vpack.c.bf16 %v874_v46, %v870_v59  ;;  %v811_v16 = vadd.f32 %v810_v22, %v490_v13  ;;  %v875_v43 = vmax.f32 %v648_v6, 0.0  ;;  %v884_v13 = vld [vmem:[%s3205_s3 + $0x8] sm:$0xff] }
 0x18e   : > { %v653_v4 = vpop.f32.mrb[30].mxu0  ;;  %1988 = vmatprep.subr.bf16.mxu0 %v1987_v61  ;;  %v877_v35 = vmax.f32 %v809_v7, 0.0  ;;  %v876_v48 = vmax.f32 %v650_v29, 0.0  ;;  %v1567_v7 = vpop.permute.xlu1 %1566 }
 0x18f   : > { %v654_v31 = vadd.f32 %v653_v4, %v495_v63  ;;  %v814_v33 = vpop.f32.mrb[30].mxu1  ;;  %2020 = vmatprep.subr.bf16.mxu1 %v2019_v24  ;;  %v655_v15 = vpop.f32.mrb[31].mxu0  ;;  %1990 = vmatpush1.bf16.msra.mxu0 %v1989_v60  ;;  %v878_v56 = vmax.f32 %v811_v16, 0.0  ;;  %v883_v60 = vld [vmem:[%s3205_s3] sm:$0xff] }
 0x190   : > { %v815_v34 = vadd.f32 %v814_v33, %v495_v63  ;;  %v656_v38 = vadd.f32 %v655_v15, %v495_v63  ;;  %v816_v25 = vpop.f32.mrb[31].mxu1  ;;  %2022 = vmatpush1.bf16.msra.mxu1 %v2021_v62 }
 0x191   : > { %v879_v30 = vmax.f32 %v654_v31, 0.0  ;;  %v817_v44 = vadd.f32 %v816_v25, %v495_v63 }
 0x192   : > { %v881_v49 = vmax.f32 %v815_v34, 0.0  ;;  %v880_v50 = vmax.f32 %v656_v38, 0.0 }
 0x193   : > { %v1993_v57 = vpack.c.bf16 %v879_v30, %v875_v43  ;;  %v882_v59 = vmax.f32 %v817_v44, 0.0 }
 0x194   : > { %v2025_v46 = vpack.c.bf16 %v881_v49, %v877_v35  ;;  %v1991_v11 = vpack.c.bf16 %v880_v50, %v876_v48 }
 0x195   : > { %v2023_v12 = vpack.c.bf16 %v882_v59, %v878_v56 }
 0x196   : > { %1992 = vmatprep.subr.bf16.mxu0 %v1991_v11 }
 0x197   : > { %2024 = vmatprep.subr.bf16.mxu1 %v2023_v12  ;;  %1994 = vmatpush1.bf16.msra.mxu0 %v1993_v57  ;;  %v1577_v57 = vpop.permute.xlu1 %1576 }
 0x198   : > { %2026 = vmatpush1.bf16.msra.mxu1 %v2025_v46  ;;  %2028 = vmatprep.subr.bf16.mxu0 %v2603_v5  ;;  %v885_v5 = vld [vmem:[%s3205_s3 + $0x10] sm:$0xff] }
 0x199   : > { %2060 = vmatprep.subr.bf16.mxu1 %v2608_v9  ;;  %v886_v9 = vld [vmem:[%s3205_s3 + $0x18] sm:$0xff] }
 0x19a   : > { %964 = vmatmul.mubr.f32.vlgmr.msra.gmra.mrb[32].mxu0 %v883_v60 }
 0x19b   : > { %1125 = vmatmul.mubr.f32.vlgmr.msra.gmra.mrb[32].mxu1 %v883_v60  ;;  %969 = vmatprep.mubr.f32.mxu0 %v2390_v0 }
 0x19c   : > { %1130 = vmatprep.mubr.f32.mxu1 %v2390_v0  ;;  %2030 = vmatpush1.bf16.msra.mxu0 %v2610_v10  ;;  %v887_v10 = vld [vmem:[%s3205_s3 + $0x20] sm:$0xff] }
 0x19d   : > { %2062 = vmatpush1.bf16.msra.mxu1 %v2616_v14  ;;  %2032 = vmatprep.subr.bf16.mxu0 %v2623_v18  ;;  %v888_v14 = vld [vmem:[%s3205_s3 + $0x28] sm:$0xff]  ;;  %v889_v18 = vld [vmem:[%s3205_s3 + $0x30] sm:$0xff] }
 0x19e   : > { %970 = vmatmul.mubr.f32.gmra.mrb[34].mxu0 %v884_v13  ;;  %2064 = vmatprep.subr.bf16.mxu1 %v2625_v19  ;;  %v890_v19 = vld [vmem:[%s3205_s3 + $0x38] sm:$0xff] }
 0x19f   : > { %1131 = vmatmul.mubr.f32.gmra.mrb[34].mxu1 %v884_v13  ;;  %975 = vmatprep.mubr.f32.mxu0 %v2390_v0 }
 0x1a0   : > { %1136 = vmatprep.mubr.f32.mxu1 %v2390_v0  ;;  %2034 = vmatpush1.bf16.msra.mxu0 %v2631_v23  ;;  %v891_v23 = vld [vmem:[%s3205_s3 + $0x40] sm:$0xff] }
 0x1a1   : > { %2066 = vmatpush1.bf16.msra.mxu1 %v2638_v27  ;;  %2036 = vmatprep.subr.bf16.mxu0 %v2640_v28  ;;  %v892_v27 = vld [vmem:[%s3205_s3 + $0x48] sm:$0xff]  ;;  %v893_v28 = vld [vmem:[%s3205_s3 + $0x50] sm:$0xff] }
 0x1a2   : > { %976 = vmatmul.mubr.f32.gmra.mrb[36].mxu0 %v885_v5  ;;  %2068 = vmatprep.subr.bf16.mxu1 %v2645_v32  ;;  %v894_v32 = vld [vmem:[%s3205_s3 + $0x58] sm:$0xff] }
 0x1a3   : > { %1137 = vmatmul.mubr.f32.gmra.mrb[36].mxu1 %v885_v5  ;;  %981 = vmatprep.mubr.f32.mxu0 %v2390_v0 }
 0x1a4   : > { %1142 = vmatprep.mubr.f32.mxu1 %v2390_v0  ;;  %2038 = vmatpush1.bf16.msra.mxu0 %v2651_v36  ;;  %v895_v36 = vld [vmem:[%s3205_s3 + $0x60] sm:$0xff] }
 0x1a5   : > { %2070 = vmatpush1.bf16.msra.mxu1 %v2658_v40  ;;  %2040 = vmatprep.subr.bf16.mxu0 %v2660_v41  ;;  %v896_v40 = vld [vmem:[%s3205_s3 + $0x68] sm:$0xff]  ;;  %v897_v41 = vld [vmem:[%s3205_s3 + $0x70] sm:$0xff] }
 0x1a6   : > { %982 = vmatmul.mubr.f32.gmra.mrb[38].mxu0 %v886_v9  ;;  %2072 = vmatprep.subr.bf16.mxu1 %v2666_v45  ;;  %v898_v45 = vld [vmem:[%s3205_s3 + $0x78] sm:$0xff] }
 0x1a7   : > { %1143 = vmatmul.mubr.f32.gmra.mrb[38].mxu1 %v886_v9  ;;  %987 = vmatprep.mubr.f32.mxu0 %v2390_v0 }
 0x1a8   : > { %1148 = vmatprep.mubr.f32.mxu1 %v2390_v0  ;;  %2042 = vmatpush1.bf16.msra.mxu0 %v2675_v52  ;;  %v369_v52 = vld [vmem:[#allocation5] sm:$0xff] }
 0x1a9   : > { %2074 = vmatpush1.bf16.msra.mxu1 %v2679_v53  ;;  %2044 = vmatprep.subr.bf16.mxu0 %v2681_v54  ;;  %v370_v53 = vld [vmem:[#allocation5 + $0x8] sm:$0xff]  ;;  %v371_v54 = vld [vmem:[#allocation5 + $0x10] sm:$0xff] }
 0x1aa   : > { %988 = vmatmul.mubr.f32.gmra.mrb[40].mxu0 %v887_v10  ;;  %2076 = vmatprep.subr.bf16.mxu1 %v2687_v58  ;;  %v372_v58 = vld [vmem:[#allocation5 + $0x18] sm:$0xff] }
 0x1ab   : > { %1149 = vmatmul.mubr.f32.gmra.mrb[40].mxu1 %v887_v10  ;;  %993 = vmatprep.mubr.f32.mxu0 %v2390_v0 }
 0x1ac   : > { %1154 = vmatprep.mubr.f32.mxu1 %v2390_v0  ;;  %2046 = vmatpush1.bf16.msra.mxu0 %v2695_v1  ;;  %v373_v1 = vld [vmem:[#allocation5 + $0x20] sm:$0xff] }
 0x1ad   : > { %2078 = vmatpush1.bf16.msra.mxu1 %v2699_v2  ;;  %2048 = vmatprep.subr.bf16.mxu0 %v2701_v3  ;;  %v374_v2 = vld [vmem:[#allocation5 + $0x28] sm:$0xff]  ;;  %v375_v3 = vld [vmem:[#allocation5 + $0x30] sm:$0xff] }
 0x1ae   : > { %994 = vmatmul.mubr.f32.gmra.mrb[42].mxu0 %v888_v14  ;;  %2080 = vmatprep.subr.bf16.mxu1 %v2707_v8  ;;  %v376_v8 = vld [vmem:[#allocation5 + $0x38] sm:$0xff] }
 0x1af   : > { %1155 = vmatmul.mubr.f32.gmra.mrb[42].mxu1 %v888_v14  ;;  %999 = vmatprep.mubr.f32.mxu0 %v2390_v0 }
 0x1b0   : > { %1160 = vmatprep.mubr.f32.mxu1 %v2390_v0  ;;  %2050 = vmatpush1.bf16.msra.mxu0 %v2715_v17  ;;  %v377_v17 = vld [vmem:[#allocation5 + $0x40] sm:$0xff] }
 0x1b1   : > { %2082 = vmatpush1.bf16.msra.mxu1 %v2719_v20  ;;  %2052 = vmatprep.subr.bf16.mxu0 %v2721_v21  ;;  %v378_v20 = vld [vmem:[#allocation5 + $0x48] sm:$0xff]  ;;  %v379_v21 = vld [vmem:[#allocation5 + $0x50] sm:$0xff] }
 0x1b2   : > { %1000 = vmatmul.mubr.f32.gmra.mrb[44].mxu0 %v889_v18  ;;  %2084 = vmatprep.subr.bf16.mxu1 %v2727_v26  ;;  %v380_v26 = vld [vmem:[#allocation5 + $0x58] sm:$0xff] }
 0x1b3   : > { %1161 = vmatmul.mubr.f32.gmra.mrb[44].mxu1 %v889_v18  ;;  %1005 = vmatprep.mubr.f32.mxu0 %v2390_v0 }
 0x1b4   : > { %1166 = vmatprep.mubr.f32.mxu1 %v2390_v0  ;;  %2054 = vmatpush1.bf16.msra.mxu0 %v2738_v37  ;;  %v381_v37 = vld [vmem:[#allocation5 + $0x60] sm:$0xff] }
 0x1b5   : > { %2086 = vmatpush1.bf16.msra.mxu1 %v2743_v39  ;;  %2056 = vmatprep.subr.bf16.mxu0 %v2745_v42  ;;  %v382_v39 = vld [vmem:[#allocation5 + $0x68] sm:$0xff]  ;;  %v383_v42 = vld [vmem:[#allocation5 + $0x70] sm:$0xff] }
 0x1b6   : > { %1006 = vmatmul.mubr.f32.gmra.mrb[46].mxu0 %v890_v19  ;;  %2088 = vmatprep.subr.bf16.mxu1 %v2755_v47  ;;  %v384_v47 = vld [vmem:[#allocation5 + $0x78] sm:$0xff] }
 0x1b7   : > { %1167 = vmatmul.mubr.f32.gmra.mrb[46].mxu1 %v890_v19  ;;  %1011 = vmatprep.mubr.f32.mxu0 %v2390_v0 }
 0x1b8   : > { %1172 = vmatprep.mubr.f32.mxu1 %v2390_v0  ;;  %2058 = vmatpush1.bf16.msra.mxu0 %v2763_v51  ;;  %v1562_v51 = vpop.permute.xlu0 %1561 }
 0x1b9   : > { %2090 = vmatpush1.bf16.msra.mxu1 %v2767_v55 }
 0x1ba   : > { %1012 = vmatmul.mubr.f32.gmra.mrb[48].mxu0 %v891_v23 }
 0x1bb   : > { %1173 = vmatmul.mubr.f32.gmra.mrb[48].mxu1 %v891_v23  ;;  %1017 = vmatprep.mubr.f32.mxu0 %v2390_v0 }
 0x1bc   : > { %1178 = vmatprep.mubr.f32.mxu1 %v2390_v0  ;;  %v1572_v25 = vpop.permute.xlu0 %1571 }
 0x1be   : > { %1018 = vmatmul.mubr.f32.gmra.mrb[50].mxu0 %v892_v27 }
 0x1bf   : > { %1179 = vmatmul.mubr.f32.gmra.mrb[50].mxu1 %v892_v27  ;;  %1023 = vmatprep.mubr.f32.mxu0 %v2390_v0 }
 0x1c0   : > { %1184 = vmatprep.mubr.f32.mxu1 %v2390_v0  ;;  %v1582_v10 = vpop.permute.xlu0 %1581 }
 0x1c2   : > { %1024 = vmatmul.mubr.f32.gmra.mrb[52].mxu0 %v893_v28 }
 0x1c3   : > { %1185 = vmatmul.mubr.f32.gmra.mrb[52].mxu1 %v893_v28  ;;  %1029 = vmatprep.mubr.f32.mxu0 %v2390_v0 }
 0x1c4   : > { %1190 = vmatprep.mubr.f32.mxu1 %v2390_v0 }
 0x1c6   : > { %1030 = vmatmul.mubr.f32.gmra.mrb[54].mxu0 %v894_v32 }
 0x1c7   : > { %1191 = vmatmul.mubr.f32.gmra.mrb[54].mxu1 %v894_v32  ;;  %1035 = vmatprep.mubr.f32.mxu0 %v2390_v0 }
 0x1c8   : > { %1196 = vmatprep.mubr.f32.mxu1 %v2390_v0 }
 0x1ca   : > { %1036 = vmatmul.mubr.f32.gmra.mrb[56].mxu0 %v895_v36 }
 0x1cb   : > { %1197 = vmatmul.mubr.f32.gmra.mrb[56].mxu1 %v895_v36  ;;  %1041 = vmatprep.mubr.f32.mxu0 %v2390_v0 }
 0x1cc   : > { %1202 = vmatprep.mubr.f32.mxu1 %v2390_v0 }
 0x1ce   : > { %1042 = vmatmul.mubr.f32.gmra.mrb[58].mxu0 %v896_v40 }
 0x1cf   : > { %1203 = vmatmul.mubr.f32.gmra.mrb[58].mxu1 %v896_v40  ;;  %1047 = vmatprep.mubr.f32.mxu0 %v2390_v0  ;;  %v1587_v40 = vpop.permute.xlu1 %1586 }
 0x1d0   : > { %1208 = vmatprep.mubr.f32.mxu1 %v2390_v0 }
 0x1d2   : > { %1048 = vmatmul.mubr.f32.gmra.mrb[60].mxu0 %v897_v41 }
 0x1d3   : > { %1209 = vmatmul.mubr.f32.gmra.mrb[60].mxu1 %v897_v41  ;;  %1053 = vmatprep.mubr.f32.mxu0 %v2390_v0 }
 0x1d4   : > { %1214 = vmatprep.mubr.f32.mxu1 %v2390_v0 }
 0x1d6   : > { %1054 = vmatmul.mubr.f32.gmra.mrb[62].mxu0 %v898_v45 }
 0x1d7   : > { %1215 = vmatmul.mubr.f32.gmra.mrb[62].mxu1 %v898_v45  ;;  %1285 = vmatprep.mubr.f32.mxu0 %v2390_v0 }
 0x1d8   : > { %1446 = vmatprep.mubr.f32.mxu1 %v2390_v0 }
 0x1da   : > { %1286 = vmatmul.mubr.f32.vlgmr.msra.gmra.mrb[32].mxu0 %v369_v52 }
 0x1db   : > { %1447 = vmatmul.mubr.f32.vlgmr.msra.gmra.mrb[32].mxu1 %v369_v52  ;;  %1291 = vmatprep.mubr.f32.mxu0 %v2390_v0 }
 0x1dc   : > { %1452 = vmatprep.mubr.f32.mxu1 %v2390_v0 }
 0x1de   : > { %1292 = vmatmul.mubr.f32.gmra.mrb[34].mxu0 %v370_v53 }
 0x1df   : > { %1453 = vmatmul.mubr.f32.gmra.mrb[34].mxu1 %v370_v53  ;;  %1297 = vmatprep.mubr.f32.mxu0 %v2390_v0 }
 0x1e0   : > { %1458 = vmatprep.mubr.f32.mxu1 %v2390_v0 }
 0x1e2   : > { %1298 = vmatmul.mubr.f32.gmra.mrb[36].mxu0 %v371_v54 }
 0x1e3   : > { %1459 = vmatmul.mubr.f32.gmra.mrb[36].mxu1 %v371_v54  ;;  %1303 = vmatprep.mubr.f32.mxu0 %v2390_v0 }
 0x1e4   : > { %1464 = vmatprep.mubr.f32.mxu1 %v2390_v0 }
 0x1e6   : > { %1304 = vmatmul.mubr.f32.gmra.mrb[38].mxu0 %v372_v58 }
 0x1e7   : > { %1465 = vmatmul.mubr.f32.gmra.mrb[38].mxu1 %v372_v58  ;;  %1309 = vmatprep.mubr.f32.mxu0 %v2390_v0 }
 0x1e8   : > { %1470 = vmatprep.mubr.f32.mxu1 %v2390_v0 }
 0x1ea   : > { %1310 = vmatmul.mubr.f32.gmra.mrb[40].mxu0 %v373_v1 }
 0x1eb   : > { %1471 = vmatmul.mubr.f32.gmra.mrb[40].mxu1 %v373_v1  ;;  %1315 = vmatprep.mubr.f32.mxu0 %v2390_v0 }
 0x1ec   : > { %1476 = vmatprep.mubr.f32.mxu1 %v2390_v0 }
 0x1ee   : > { %1316 = vmatmul.mubr.f32.gmra.mrb[42].mxu0 %v374_v2 }
 0x1ef   : > { %1477 = vmatmul.mubr.f32.gmra.mrb[42].mxu1 %v374_v2  ;;  %1321 = vmatprep.mubr.f32.mxu0 %v2390_v0 }
 0x1f0   : > { %1482 = vmatprep.mubr.f32.mxu1 %v2390_v0 }
 0x1f2   : > { %1322 = vmatmul.mubr.f32.gmra.mrb[44].mxu0 %v375_v3 }
 0x1f3   : > { %1483 = vmatmul.mubr.f32.gmra.mrb[44].mxu1 %v375_v3  ;;  %1327 = vmatprep.mubr.f32.mxu0 %v2390_v0  ;;  %v1592_v3 = vpop.permute.xlu0 %1591 }
 0x1f4   : > { %1488 = vmatprep.mubr.f32.mxu1 %v2390_v0 }
 0x1f6   : > { %1328 = vmatmul.mubr.f32.gmra.mrb[46].mxu0 %v376_v8 }
 0x1f7   : > { %1489 = vmatmul.mubr.f32.gmra.mrb[46].mxu1 %v376_v8  ;;  %1333 = vmatprep.mubr.f32.mxu0 %v2390_v0 }
 0x1f8   : > { %1494 = vmatprep.mubr.f32.mxu1 %v2390_v0 }
 0x1fa   : > { %1334 = vmatmul.mubr.f32.gmra.mrb[48].mxu0 %v377_v17 }
 0x1fb   : > { %1495 = vmatmul.mubr.f32.gmra.mrb[48].mxu1 %v377_v17  ;;  %1339 = vmatprep.mubr.f32.mxu0 %v2390_v0 }
 0x1fc   : > { %1500 = vmatprep.mubr.f32.mxu1 %v2390_v0 }
 0x1fe   : > { %1340 = vmatmul.mubr.f32.gmra.mrb[50].mxu0 %v378_v20 }
 0x1ff   : > { %1501 = vmatmul.mubr.f32.gmra.mrb[50].mxu1 %v378_v20  ;;  %1345 = vmatprep.mubr.f32.mxu0 %v2390_v0 }
 0x200   : > { %1506 = vmatprep.mubr.f32.mxu1 %v2390_v0 }
 0x202   : > { %1346 = vmatmul.mubr.f32.gmra.mrb[52].mxu0 %v379_v21 }
 0x203   : > { %1507 = vmatmul.mubr.f32.gmra.mrb[52].mxu1 %v379_v21  ;;  %1351 = vmatprep.mubr.f32.mxu0 %v2390_v0 }
 0x204   : > { %1512 = vmatprep.mubr.f32.mxu1 %v2390_v0 }
 0x206   : > { %1352 = vmatmul.mubr.f32.gmra.mrb[54].mxu0 %v380_v26 }
 0x207   : > { %1513 = vmatmul.mubr.f32.gmra.mrb[54].mxu1 %v380_v26  ;;  %1357 = vmatprep.mubr.f32.mxu0 %v2390_v0 }
 0x208   : > { %1518 = vmatprep.mubr.f32.mxu1 %v2390_v0 }
 0x20a   : > { %1358 = vmatmul.mubr.f32.gmra.mrb[56].mxu0 %v381_v37 }
 0x20b   : > { %1519 = vmatmul.mubr.f32.gmra.mrb[56].mxu1 %v381_v37  ;;  %1363 = vmatprep.mubr.f32.mxu0 %v2390_v0 }
 0x20c   : > { %1524 = vmatprep.mubr.f32.mxu1 %v2390_v0 }
 0x20e   : > { %1364 = vmatmul.mubr.f32.gmra.mrb[58].mxu0 %v382_v39 }
 0x20f   : > { %1525 = vmatmul.mubr.f32.gmra.mrb[58].mxu1 %v382_v39  ;;  %1369 = vmatprep.mubr.f32.mxu0 %v2390_v0 }
 0x210   : > { %1530 = vmatprep.mubr.f32.mxu1 %v2390_v0 }
 0x212   : > { %1370 = vmatmul.mubr.f32.gmra.mrb[60].mxu0 %v383_v42 }
 0x213   : > { %1531 = vmatmul.mubr.f32.gmra.mrb[60].mxu1 %v383_v42  ;;  %1375 = vmatprep.mubr.f32.mxu0 %v2390_v0 }
 0x214   : > { %1536 = vmatprep.mubr.f32.mxu1 %v2390_v0 }
 0x216   : > { %1376 = vmatmul.mubr.f32.gmra.mrb[62].mxu0 %v384_v47 }
 0x217   : > { %1537 = vmatmul.mubr.f32.gmra.mrb[62].mxu1 %v384_v47  ;;  %v1597_v47 = vpop.permute.xlu1 %1596 }
 0x2ad   : > { %v1287_v55 = vpop.f32.mrb[32].mxu0 }
 0x2ae   : > { %v1639_v62 = vadd.f32 %v1562_v51, %v1287_v55  ;;  %v1448_v61 = vpop.f32.mrb[32].mxu1  ;;  %v1289_v22 = vpop.f32.mrb[33].mxu0 }
 0x2af   : > { %v1641_v24 = vadd.f32 %v1562_v51, %v1448_v61  ;;  %v1640_v6 = vadd.f32 %v1562_v51, %v1289_v22  ;;  %v1450_v63 = vpop.f32.mrb[33].mxu1 }
 0x2b0   : > { %1703 = vst [vmem:[%s3080_s28] sm:$0xff] %v1639_v62  ;;  %v1642_v0 = vadd.f32 %v1562_v51, %v1450_v63 }
 0x2b1   : > { %1705 = vst [vmem:[%s3080_s28 + $0x10] sm:$0xff] %v1641_v24  ;;  %1704 = vst [vmem:[%s3080_s28 + $0x8] sm:$0xff] %v1640_v6  ;;  %v1293_v29 = vpop.f32.mrb[34].mxu0 }
 0x2b2   : > { %1706 = vst [vmem:[%s3080_s28 + $0x18] sm:$0xff] %v1642_v0  ;;  %v1643_v4 = vadd.f32 %v1567_v7, %v1293_v29  ;;  %v1454_v16 = vpop.f32.mrb[34].mxu1  ;;  %v1295_v31 = vpop.f32.mrb[35].mxu0 }
 0x2b3   : > { %v1645_v33 = vadd.f32 %v1567_v7, %v1454_v16  ;;  %v1644_v15 = vadd.f32 %v1567_v7, %v1295_v31  ;;  %v1456_v34 = vpop.f32.mrb[35].mxu1  ;;  %v1602_v0 = vpop.permute.xlu0 %1601 }
 0x2b4   : > { %1707 = vst [vmem:[%s3080_s28 + $0x20] sm:$0xff] %v1643_v4  ;;  %v1646_v38 = vadd.f32 %v1567_v7, %v1456_v34 }
 0x2b5   : > { %1709 = vst [vmem:[%s3080_s28 + $0x30] sm:$0xff] %v1645_v33  ;;  %1708 = vst [vmem:[%s3080_s28 + $0x28] sm:$0xff] %v1644_v15  ;;  %v1299_v43 = vpop.f32.mrb[36].mxu0 }
 0x2b6   : > { %1710 = vst [vmem:[%s3080_s28 + $0x38] sm:$0xff] %v1646_v38  ;;  %v1647_v30 = vadd.f32 %v1572_v25, %v1299_v43  ;;  %v1460_v44 = vpop.f32.mrb[36].mxu1  ;;  %v1301_v35 = vpop.f32.mrb[37].mxu0 }
 0x2b7   : > { %v1649_v48 = vadd.f32 %v1572_v25, %v1460_v44  ;;  %v1648_v49 = vadd.f32 %v1572_v25, %v1301_v35  ;;  %v1462_v50 = vpop.f32.mrb[37].mxu1  ;;  %v1607_v38 = vpop.permute.xlu1 %1606 }
 0x2b8   : > { %1711 = vst [vmem:[%s3080_s28 + $0x40] sm:$0xff] %v1647_v30  ;;  %v1650_v56 = vadd.f32 %v1572_v25, %v1462_v50 }
 0x2b9   : > { %1713 = vst [vmem:[%s3080_s28 + $0x50] sm:$0xff] %v1649_v48  ;;  %1712 = vst [vmem:[%s3080_s28 + $0x48] sm:$0xff] %v1648_v49  ;;  %v1305_v59 = vpop.f32.mrb[38].mxu0 }
 0x2ba   : > { %1714 = vst [vmem:[%s3080_s28 + $0x58] sm:$0xff] %v1650_v56  ;;  %v1651_v46 = vadd.f32 %v1577_v57, %v1305_v59  ;;  %v1466_v11 = vpop.f32.mrb[38].mxu1  ;;  %v1307_v12 = vpop.f32.mrb[39].mxu0 }
 0x2bb   : > { %v1653_v60 = vadd.f32 %v1577_v57, %v1466_v11  ;;  %v1652_v13 = vadd.f32 %v1577_v57, %v1307_v12  ;;  %v1468_v5 = vpop.f32.mrb[39].mxu1  ;;  %v1612_v56 = vpop.permute.xlu0 %1611 }
 0x2bc   : > { %1715 = vst [vmem:[%s3080_s28 + $0x60] sm:$0xff] %v1651_v46  ;;  %v1654_v9 = vadd.f32 %v1577_v57, %v1468_v5 }
 0x2bd   : > { %1717 = vst [vmem:[%s3080_s28 + $0x70] sm:$0xff] %v1653_v60  ;;  %1716 = vst [vmem:[%s3080_s28 + $0x68] sm:$0xff] %v1652_v13  ;;  %v1311_v14 = vpop.f32.mrb[40].mxu0 }
 0x2be   : > { %1718 = vst [vmem:[%s3080_s28 + $0x78] sm:$0xff] %v1654_v9  ;;  %v1655_v18 = vadd.f32 %v1582_v10, %v1311_v14  ;;  %v1472_v19 = vpop.f32.mrb[40].mxu1  ;;  %v1313_v23 = vpop.f32.mrb[41].mxu0 }
 0x2bf   : > { %v1657_v27 = vadd.f32 %v1582_v10, %v1472_v19  ;;  %v1656_v28 = vadd.f32 %v1582_v10, %v1313_v23  ;;  %v1474_v32 = vpop.f32.mrb[41].mxu1  ;;  %v1617_v9 = vpop.permute.xlu1 %1616 }
 0x2c0   : > { %1719 = vst [vmem:[%s3080_s28 + $0x80] sm:$0xff] %v1655_v18  ;;  %v1658_v36 = vadd.f32 %v1582_v10, %v1474_v32 }
 0x2c1   : > { %1721 = vst [vmem:[%s3080_s28 + $0x90] sm:$0xff] %v1657_v27  ;;  %1720 = vst [vmem:[%s3080_s28 + $0x88] sm:$0xff] %v1656_v28  ;;  %v1317_v41 = vpop.f32.mrb[42].mxu0 }
 0x2c2   : > { %1722 = vst [vmem:[%s3080_s28 + $0x98] sm:$0xff] %v1658_v36  ;;  %v1659_v45 = vadd.f32 %v1587_v40, %v1317_v41  ;;  %v1478_v52 = vpop.f32.mrb[42].mxu1  ;;  %v1319_v53 = vpop.f32.mrb[43].mxu0 }
 0x2c3   : > { %v1661_v54 = vadd.f32 %v1587_v40, %v1478_v52  ;;  %v1660_v58 = vadd.f32 %v1587_v40, %v1319_v53  ;;  %v1480_v1 = vpop.f32.mrb[43].mxu1  ;;  %v1622_v36 = vpop.permute.xlu0 %1621 }
 0x2c4   : > { %1723 = vst [vmem:[%s3080_s28 + $0xa0] sm:$0xff] %v1659_v45  ;;  %v1662_v2 = vadd.f32 %v1587_v40, %v1480_v1 }
 0x2c5   : > { %1725 = vst [vmem:[%s3080_s28 + $0xb0] sm:$0xff] %v1661_v54  ;;  %1724 = vst [vmem:[%s3080_s28 + $0xa8] sm:$0xff] %v1660_v58  ;;  %v1323_v8 = vpop.f32.mrb[44].mxu0 }
 0x2c6   : > { %1726 = vst [vmem:[%s3080_s28 + $0xb8] sm:$0xff] %v1662_v2  ;;  %v1663_v17 = vadd.f32 %v1592_v3, %v1323_v8  ;;  %v1484_v20 = vpop.f32.mrb[44].mxu1  ;;  %v1325_v21 = vpop.f32.mrb[45].mxu0 }
 0x2c7   : > { %v1665_v26 = vadd.f32 %v1592_v3, %v1484_v20  ;;  %v1664_v37 = vadd.f32 %v1592_v3, %v1325_v21  ;;  %v1486_v39 = vpop.f32.mrb[45].mxu1  ;;  %v1627_v2 = vpop.permute.xlu1 %1626 }
 0x2c8   : > { %1727 = vst [vmem:[%s3080_s28 + $0xc0] sm:$0xff] %v1663_v17  ;;  %v1666_v42 = vadd.f32 %v1592_v3, %v1486_v39 }
 0x2c9   : > { %1729 = vst [vmem:[%s3080_s28 + $0xd0] sm:$0xff] %v1665_v26  ;;  %1728 = vst [vmem:[%s3080_s28 + $0xc8] sm:$0xff] %v1664_v37  ;;  %v1329_v51 = vpop.f32.mrb[46].mxu0 }
 0x2ca   : > { %1730 = vst [vmem:[%s3080_s28 + $0xd8] sm:$0xff] %v1666_v42  ;;  %v1667_v55 = vadd.f32 %v1597_v47, %v1329_v51  ;;  %v1490_v62 = vpop.f32.mrb[46].mxu1  ;;  %v1331_v61 = vpop.f32.mrb[47].mxu0 }
 0x2cb   : > { %v1669_v22 = vadd.f32 %v1597_v47, %v1490_v62  ;;  %v1668_v24 = vadd.f32 %v1597_v47, %v1331_v61  ;;  %v1492_v6 = vpop.f32.mrb[47].mxu1  ;;  %v1632_v42 = vpop.permute.xlu0 %1631 }
 0x2cc   : > { %1731 = vst [vmem:[%s3080_s28 + $0xe0] sm:$0xff] %v1667_v55  ;;  %v1670_v63 = vadd.f32 %v1597_v47, %v1492_v6 }
 0x2cd   : > { %1733 = vst [vmem:[%s3080_s28 + $0xf0] sm:$0xff] %v1669_v22  ;;  %1732 = vst [vmem:[%s3080_s28 + $0xe8] sm:$0xff] %v1668_v24  ;;  %v1335_v7 = vpop.f32.mrb[48].mxu0 }
 0x2ce   : > { %1734 = vst [vmem:[%s3080_s28 + $0xf8] sm:$0xff] %v1670_v63  ;;  %v1671_v29 = vadd.f32 %v1602_v0, %v1335_v7  ;;  %v1496_v4 = vpop.f32.mrb[48].mxu1  ;;  %v1337_v16 = vpop.f32.mrb[49].mxu0 }
 0x2cf   : > { %v1673_v31 = vadd.f32 %v1602_v0, %v1496_v4  ;;  %v1672_v33 = vadd.f32 %v1602_v0, %v1337_v16  ;;  %v1498_v15 = vpop.f32.mrb[49].mxu1  ;;  %v1637_v63 = vpop.permute.xlu1 %1636 }
 0x2d0   : > { %1735 = vst [vmem:[%s3080_s28 + $0x100] sm:$0xff] %v1671_v29  ;;  %v1674_v34 = vadd.f32 %v1602_v0, %v1498_v15 }
 0x2d1   : > { %1737 = vst [vmem:[%s3080_s28 + $0x110] sm:$0xff] %v1673_v31  ;;  %1736 = vst [vmem:[%s3080_s28 + $0x108] sm:$0xff] %v1672_v33  ;;  %v1341_v25 = vpop.f32.mrb[50].mxu0 }
 0x2d2   : > { %1738 = vst [vmem:[%s3080_s28 + $0x118] sm:$0xff] %v1674_v34  ;;  %v1675_v43 = vadd.f32 %v1607_v38, %v1341_v25  ;;  %v1502_v30 = vpop.f32.mrb[50].mxu1  ;;  %v1343_v44 = vpop.f32.mrb[51].mxu0 }
 0x2d3   : > { %v1677_v35 = vadd.f32 %v1607_v38, %v1502_v30  ;;  %v1676_v48 = vadd.f32 %v1607_v38, %v1343_v44  ;;  %v1504_v49 = vpop.f32.mrb[51].mxu1 }
 0x2d4   : > { %1739 = vst [vmem:[%s3080_s28 + $0x120] sm:$0xff] %v1675_v43  ;;  %v1678_v50 = vadd.f32 %v1607_v38, %v1504_v49 }
 0x2d5   : > { %1741 = vst [vmem:[%s3080_s28 + $0x130] sm:$0xff] %v1677_v35  ;;  %1740 = vst [vmem:[%s3080_s28 + $0x128] sm:$0xff] %v1676_v48  ;;  %v1347_v57 = vpop.f32.mrb[52].mxu0 }
 0x2d6   : > { %1742 = vst [vmem:[%s3080_s28 + $0x138] sm:$0xff] %v1678_v50  ;;  %v1679_v59 = vadd.f32 %v1612_v56, %v1347_v57  ;;  %v1508_v46 = vpop.f32.mrb[52].mxu1  ;;  %v1349_v11 = vpop.f32.mrb[53].mxu0 }
 0x2d7   : > { %v1681_v12 = vadd.f32 %v1612_v56, %v1508_v46  ;;  %v1680_v60 = vadd.f32 %v1612_v56, %v1349_v11  ;;  %v1510_v13 = vpop.f32.mrb[53].mxu1 }
 0x2d8   : > { %1743 = vst [vmem:[%s3080_s28 + $0x140] sm:$0xff] %v1679_v59  ;;  %v1682_v5 = vadd.f32 %v1612_v56, %v1510_v13 }
 0x2d9   : > { %1745 = vst [vmem:[%s3080_s28 + $0x150] sm:$0xff] %v1681_v12  ;;  %1744 = vst [vmem:[%s3080_s28 + $0x148] sm:$0xff] %v1680_v60  ;;  %v1353_v10 = vpop.f32.mrb[54].mxu0 }
 0x2da   : > { %1746 = vst [vmem:[%s3080_s28 + $0x158] sm:$0xff] %v1682_v5  ;;  %v1683_v14 = vadd.f32 %v1617_v9, %v1353_v10  ;;  %v1514_v18 = vpop.f32.mrb[54].mxu1  ;;  %v1355_v19 = vpop.f32.mrb[55].mxu0 }
 0x2db   : > { %v1685_v23 = vadd.f32 %v1617_v9, %v1514_v18  ;;  %v1684_v27 = vadd.f32 %v1617_v9, %v1355_v19  ;;  %v1516_v28 = vpop.f32.mrb[55].mxu1 }
 0x2dc   : > { %1747 = vst [vmem:[%s3080_s28 + $0x160] sm:$0xff] %v1683_v14  ;;  %v1686_v32 = vadd.f32 %v1617_v9, %v1516_v28 }
 0x2dd   : > { %1749 = vst [vmem:[%s3080_s28 + $0x170] sm:$0xff] %v1685_v23  ;;  %1748 = vst [vmem:[%s3080_s28 + $0x168] sm:$0xff] %v1684_v27  ;;  %v1359_v40 = vpop.f32.mrb[56].mxu0 }
 0x2de   : > { %1750 = vst [vmem:[%s3080_s28 + $0x178] sm:$0xff] %v1686_v32  ;;  %v1687_v41 = vadd.f32 %v1622_v36, %v1359_v40  ;;  %v1520_v45 = vpop.f32.mrb[56].mxu1  ;;  %v1361_v52 = vpop.f32.mrb[57].mxu0 }
 0x2df   : > { %v1689_v53 = vadd.f32 %v1622_v36, %v1520_v45  ;;  %v1688_v54 = vadd.f32 %v1622_v36, %v1361_v52  ;;  %v1522_v58 = vpop.f32.mrb[57].mxu1 }
 0x2e0   : > { %1751 = vst [vmem:[%s3080_s28 + $0x180] sm:$0xff] %v1687_v41  ;;  %v1690_v1 = vadd.f32 %v1622_v36, %v1522_v58 }
 0x2e1   : > { %1753 = vst [vmem:[%s3080_s28 + $0x190] sm:$0xff] %v1689_v53  ;;  %1752 = vst [vmem:[%s3080_s28 + $0x188] sm:$0xff] %v1688_v54  ;;  %v1365_v3 = vpop.f32.mrb[58].mxu0 }
 0x2e2   : > { %1754 = vst [vmem:[%s3080_s28 + $0x198] sm:$0xff] %v1690_v1  ;;  %v1691_v8 = vadd.f32 %v1627_v2, %v1365_v3  ;;  %v1526_v17 = vpop.f32.mrb[58].mxu1  ;;  %v1367_v20 = vpop.f32.mrb[59].mxu0 }
 0x2e3   : > { %v1693_v21 = vadd.f32 %v1627_v2, %v1526_v17  ;;  %v1692_v26 = vadd.f32 %v1627_v2, %v1367_v20  ;;  %v1528_v37 = vpop.f32.mrb[59].mxu1 }
 0x2e4   : > { %1755 = vst [vmem:[%s3080_s28 + $0x1a0] sm:$0xff] %v1691_v8  ;;  %v1694_v39 = vadd.f32 %v1627_v2, %v1528_v37 }
 0x2e5   : > { %1757 = vst [vmem:[%s3080_s28 + $0x1b0] sm:$0xff] %v1693_v21  ;;  %1756 = vst [vmem:[%s3080_s28 + $0x1a8] sm:$0xff] %v1692_v26  ;;  %v1371_v47 = vpop.f32.mrb[60].mxu0 }
 0x2e6   : > { %1758 = vst [vmem:[%s3080_s28 + $0x1b8] sm:$0xff] %v1694_v39  ;;  %v1695_v51 = vadd.f32 %v1632_v42, %v1371_v47  ;;  %v1532_v55 = vpop.f32.mrb[60].mxu1  ;;  %v1373_v62 = vpop.f32.mrb[61].mxu0 }
 0x2e7   : > { %v1697_v61 = vadd.f32 %v1632_v42, %v1532_v55  ;;  %v1696_v22 = vadd.f32 %v1632_v42, %v1373_v62  ;;  %v1534_v24 = vpop.f32.mrb[61].mxu1 }
 0x2e8   : > { %1759 = vst [vmem:[%s3080_s28 + $0x1c0] sm:$0xff] %v1695_v51  ;;  %v1698_v6 = vadd.f32 %v1632_v42, %v1534_v24 }
 0x2e9   : > { %1761 = vst [vmem:[%s3080_s28 + $0x1d0] sm:$0xff] %v1697_v61  ;;  %1760 = vst [vmem:[%s3080_s28 + $0x1c8] sm:$0xff] %v1696_v22  ;;  %v1377_v0 = vpop.f32.mrb[62].mxu0 }
 0x2ea   : > { %1762 = vst [vmem:[%s3080_s28 + $0x1d8] sm:$0xff] %v1698_v6  ;;  %v1699_v7 = vadd.f32 %v1637_v63, %v1377_v0  ;;  %v1538_v29 = vpop.f32.mrb[62].mxu1  ;;  %v1379_v4 = vpop.f32.mrb[63].mxu0 }
 0x2eb   : > { %v1701_v16 = vadd.f32 %v1637_v63, %v1538_v29  ;;  %v1700_v31 = vadd.f32 %v1637_v63, %v1379_v4  ;;  %v1540_v33 = vpop.f32.mrb[63].mxu1 }
 0x2ec   : > { %1763 = vst [vmem:[%s3080_s28 + $0x1e0] sm:$0xff] %v1699_v7  ;;  %v1702_v15 = vadd.f32 %v1637_v63, %v1540_v33 }
 0x2ed   : > { %1765 = vst [vmem:[%s3080_s28 + $0x1f0] sm:$0xff] %v1701_v16  ;;  %1764 = vst [vmem:[%s3080_s28 + $0x1e8] sm:$0xff] %v1700_v31 }
 0x2ee   : > { %1766 = vst [vmem:[%s3080_s28 + $0x1f8] sm:$0xff] %v1702_v15 }
 0x2ef   : > { %2309 = shalt.err (!%p2306_p5)
}
 0x2f0   : > { %s2310_s12 = scalar_lea.hbm %s3147_s24, 8192  ;;  %s2314_s28 = scalar_lea.hbm %s3208_s6, 16384 }
 0x2f1   : > { %p2311_p9 = scmp.ne.s32.totalorder %s3147_s24, %s2310_s12  ;;  %p2315_p3 = scmp.lt.u32.totalorder %s3147_s24, %s3208_s6 }
 0x2f2   : > { %p2316_p7 = scmp.lt.u32.totalorder %s2314_s28, %s2310_s12  ;;  %p2318_p4 = scmp.lt.u32.totalorder %s2310_s12, %s3147_s24 }
 0x2f3   : > { %p2312_p1 = pnand %p2311_p9, %p2526_p10 }
 0x2f4   : > { %p2317_p13 = por %p2316_p7, %p2315_p3 }
 0x2f5   : > { %p2313_p2 = pneg %p2312_p1 }
 0x2f6   : > { %p2319_p6 = por %p2318_p4, %p2317_p13 }
 0x2f8   : > { %p2320_p8 = pnand %p2319_p6, %p2313_p2 }
 0x2fa   : > { %2323 = shalt.err (!%p2320_p8)
}
 0x2fb   : > { %s2393_s27 = smov 512   ;;  %s2394_s7 = smov 32  }
 0x2fc   : > { %2161 = dma.vmem_to_hbm [thread:$0]  (%p2526_p10), %s3149_s17, 8192, %s3147_s24, %s1768_s29, %s2393_s27, %s2393_s27, %s2394_s7  }
 0x2fd PF: > { %s1798_s9 = sand.u32 1, %s2362_s21   ;;  %p3226_p12 = scmp.ne.s32.totalorder %s3216_s8, 0 }
 0x2fe   : > { %p3227_p11 = scmp.ge.s32.totalorder %s2382_s26, 2  ;;  %s1799_s14 = scalar_lea.sflag [#allocation4], %s1798_s9 }
 0x300   : > { %p2172_p0 = pnand %p3227_p11, %p3226_p12 }
 0x302   : > { %2357 = dma.done.wait (!%p2172_p0), %s1799_s14, 8192  }
 0x303   : > { %2359 = vsyncadd (!%p2172_p0), %s1799_s14, 4294959104  ;;  %s23_s26 = sadd.s32 1, %s2382_s26   ;;  %s3228_s21 = smov %s2366_s22 }
 0x304   : > { %p20_p5 = scmp.ge.s32.totalorder %s23_s26, 4   ;;  %s3229_s22 = smov %s2370_s23 }
 0x305   : > { %s3230_s23 = smov %s2535_s20  ;;  %s3231_s24 = smov %s2378_s25 }
 0x306   : > { %s3232_s25 = smov %s3234_s13  ;;  %22 = sbr.rel (!%p20_p5) target bundleno = 7 (0x7), region = 93 }
 0x30d   :  { %1804 = vsyncpa [#allocation3], 1 }
 0x30e   :  { %1806 = vsyncpa [#allocation3 + $0x1], 1 }
 0x30f   :  { %1807 = vsyncpa [#allocation6], 1 }
 0x310   :  { %1808 = vsyncpa [#allocation4], 1 }
 0x311   :  { %1810 = vsyncpa [#allocation4 + $0x1], 1 }

</bundles_post_ra>
